<compile_context>
chip_gen: v7x
topology: tpu7x:2x2x1
jax: 0.10.0
libtpu: 0.0.40
codegen_flags: <defaults>
</compile_context>

<pallas_src>
import functools

import jax
import jax.numpy as jnp
from jax.experimental import pallas as pl
from jax.experimental.pallas import tpu as pltpu


# ----------------------------------------------------------------------------
# Fused MHA kernel: one batch element per grid step.
# ----------------------------------------------------------------------------
def mha_kernel(scale, n_head, d_head,
               q_in_ref, k_in_ref, v_in_ref, mask_ref,
               wq_ref, bq_ref, wk_ref, bk_ref, wv_ref, bv_ref,
               wo_ref, bo_ref,
               out_ref, prob_ref,
               ctx_ref):
    cdt = q_in_ref.dtype                       # MXU operand dtype (bf16 or f32)

    x_q = q_in_ref[0]                          # (Sq, d_hidn)
    x_k = k_in_ref[0]                          # (Sk, d_hidn)
    x_v = v_in_ref[0]                          # (Sk, d_hidn)

    # Full-width projections: one MXU contraction each (lane width = H*Dh),
    # f32 accumulation, biases added in f32.
    q_all = jnp.dot(x_q, wq_ref[...], preferred_element_type=jnp.float32) + bq_ref[...]
    k_all = jnp.dot(x_k, wk_ref[...], preferred_element_type=jnp.float32) + bk_ref[...]
    v_all = jnp.dot(x_v, wv_ref[...], preferred_element_type=jnp.float32) + bv_ref[...]

    # Fold the softmax scale into q (O(Sq*d_proj) instead of O(H*Sq*Sk)).
    q_all = q_all * scale

    # True == masked.  Mask block is (Mq, Sk) with Mq in {1, Sq}; jnp.where
    # broadcasting handles both.
    mask = mask_ref[0] != 0

    # Per-head attention over static column slices; fully unrolled (n_head is
    # a trace-time constant).  Context accumulates into VMEM scratch.
    for h in range(n_head):
        sl = slice(h * d_head, (h + 1) * d_head)
        q_h = q_all[:, sl].astype(cdt)         # (Sq, Dh)
        k_h = k_all[:, sl].astype(cdt)         # (Sk, Dh)
        v_h = v_all[:, sl].astype(cdt)         # (Sk, Dh)

        # scores = q @ k^T  (MXU-native transposed-RHS contraction).
        s = jax.lax.dot_general(q_h, k_h, (((1,), (1,)), ((), ())),
                                preferred_element_type=jnp.float32)
        # torch masked_fill_: replace masked scores with -1e9.
        s = jnp.where(mask, jnp.float32(-1e9), s)

        # Numerically stable softmax (f32).  Rows with all keys masked give a
        # uniform distribution — same behaviour as the torch reference.
        m = jnp.max(s, axis=-1, keepdims=True)
        e = jnp.exp(s - m)
        denom = jnp.sum(e, axis=-1, keepdims=True)
        inv = pl.reciprocal(denom, approx=True)      # EUP slot (otherwise idle)
        inv = inv * (2.0 - denom * inv)              # one Newton step -> f32-accurate
        p = e * inv

        prob_ref[0, h] = p.astype(prob_ref.dtype)    # (Sq, Sk)

        # context_h = p @ v_h, written into its head slice of the scratch.
        ctx_ref[:, sl] = jnp.dot(p.astype(cdt), v_h,
                                 preferred_element_type=jnp.float32)

    # Single output projection over all heads at once.
    out = jnp.dot(ctx_ref[...].astype(cdt), wo_ref[...],
                  preferred_element_type=jnp.float32) + bo_ref[...]
    out_ref[0] = out.astype(out_ref.dtype)


# ----------------------------------------------------------------------------
# Wrapper: one pallas_call for the whole MultiHeadAttention forward.
# ----------------------------------------------------------------------------
def multi_head_attention(params, Q, K, V, attn_mask, *, n_head, d_head,
                         compute_dtype=jnp.bfloat16, prob_dtype=jnp.float32):
    B, Sq, d_hidn = Q.shape
    Sk = K.shape[1]
    d_proj = n_head * d_head
    scale = 1.0 / (d_head ** 0.5)

    # MXU operands in compute_dtype (bf16 default); f32 accumulation in-kernel.
    Qc = Q.astype(compute_dtype)
    Kc = K.astype(compute_dtype)
    Vc = V.astype(compute_dtype)
    wq = params["w_q"].astype(compute_dtype)
    wk = params["w_k"].astype(compute_dtype)
    wv = params["w_v"].astype(compute_dtype)
    wo = params["w_o"].astype(compute_dtype)
    bq = params["b_q"].reshape(1, d_proj).astype(jnp.float32)
    bk = params["b_k"].reshape(1, d_proj).astype(jnp.float32)
    bv = params["b_v"].reshape(1, d_proj).astype(jnp.float32)
    bo = params["b_o"].reshape(1, d_hidn).astype(jnp.float32)

    # int8 mask (True == masked); shape (B, Mq, Sk) with Mq in {1, Sq}
    # (padding-style masks can be passed un-broadcast to cut HBM reads Sq x).
    mask_i8 = attn_mask.astype(jnp.int8)
    Mq = mask_i8.shape[1]

    cbytes = jnp.dtype(compute_dtype).itemsize
    pbytes = jnp.dtype(prob_dtype).itemsize
    flops = 2 * B * ((Sq + 2 * Sk) * d_hidn * d_proj         # Q/K/V projections
                     + 2 * n_head * Sq * Sk * d_head         # scores + context
                     + Sq * d_proj * d_hidn)                 # output projection
    transcendentals = B * n_head * Sq * Sk                   # exp
    bytes_accessed = ((B * Sq * d_hidn + 2 * B * Sk * d_hidn) * cbytes
                      + 4 * d_hidn * d_proj * cbytes
                      + (3 * d_proj + d_hidn) * 4
                      + B * Mq * Sk
                      + B * Sq * d_hidn * 4
                      + B * n_head * Sq * Sk * pbytes)

    kernel = functools.partial(mha_kernel, scale, n_head, d_head)

    out, prob = pl.pallas_call(
        kernel,
        out_shape=(
            jax.ShapeDtypeStruct((B, Sq, d_hidn), jnp.float32),
            jax.ShapeDtypeStruct((B, n_head, Sq, Sk), prob_dtype),
        ),
        grid=(B,),
        in_specs=[
            # per-batch activations / mask
            pl.BlockSpec((1, Sq, d_hidn), lambda b: (b, 0, 0)),   # Q
            pl.BlockSpec((1, Sk, d_hidn), lambda b: (b, 0, 0)),   # K
            pl.BlockSpec((1, Sk, d_hidn), lambda b: (b, 0, 0)),   # V
            pl.BlockSpec((1, Mq, Sk),     lambda b: (b, 0, 0)),   # mask (int8)
            # weights / biases: constant index_map -> fetched once, VMEM-resident
            pl.BlockSpec((d_hidn, d_proj), lambda b: (0, 0)),     # W_Q
            pl.BlockSpec((1, d_proj),      lambda b: (0, 0)),     # b_Q
            pl.BlockSpec((d_hidn, d_proj), lambda b: (0, 0)),     # W_K
            pl.BlockSpec((1, d_proj),      lambda b: (0, 0)),     # b_K
            pl.BlockSpec((d_hidn, d_proj), lambda b: (0, 0)),     # W_V
            pl.BlockSpec((1, d_proj),      lambda b: (0, 0)),     # b_V
            pl.BlockSpec((d_proj, d_hidn), lambda b: (0, 0)),     # W_O
            pl.BlockSpec((1, d_hidn),      lambda b: (0, 0)),     # b_O
        ],
        out_specs=(
            pl.BlockSpec((1, Sq, d_hidn),        lambda b: (b, 0, 0)),
            pl.BlockSpec((1, n_head, Sq, Sk),    lambda b: (b, 0, 0, 0)),
        ),
        scratch_shapes=[pltpu.VMEM((Sq, d_proj), jnp.float32)],   # context accum
        compiler_params=pltpu.CompilerParams(
            dimension_semantics=("parallel",),
            vmem_limit_bytes=32 * 1024 * 1024),
        cost_estimate=pl.CostEstimate(flops=flops,
                                      transcendentals=transcendentals,
                                      bytes_accessed=bytes_accessed),
    )(Qc, Kc, Vc, mask_i8, wq, bq, wk, bk, wv, bv, wo, bo)

    # dropout(attn_prob), dropout(out): identity (eval mode).
    return out, prob


# ----------------------------------------------------------------------------
# Pure-JAX reference (mirrors the PyTorch module, f32 throughout).
# ----------------------------------------------------------------------------
def reference(params, Q, K, V, attn_mask, *, n_head, d_head):
    B, Sq, d_hidn = Q.shape
    Sk = K.shape[1]

    def proj(x, w, b, S):
        return (x.reshape(B * S, d_hidn) @ w + b).reshape(
            B, S, n_head, d_head).transpose(0, 2, 1, 3)

    q_s = proj(Q, params["w_q"], params["b_q"], Sq)
    k_s = proj(K, params["w_k"], params["b_k"], Sk)
    v_s = proj(V, params["w_v"], params["b_v"], Sk)
    scores = jnp.einsum("bhqd,bhkd->bhqk", q_s, k_s) / (d_head ** 0.5)
    scores = jnp.where(attn_mask[:, None, :, :], -1e9, scores)
    prob = jax.nn.softmax(scores, axis=-1)
    ctx = jnp.einsum("bhqk,bhkd->bhqd", prob, v_s)
    ctx = ctx.transpose(0, 2, 1, 3).reshape(B, Sq, n_head * d_head)
    out = ctx.reshape(B * Sq, -1) @ params["w_o"] + params["b_o"]
    return out.reshape(B, Sq, d_hidn), prob


# ----------------------------------------------------------------------------
# main
# ----------------------------------------------------------------------------
if __name__ == "__main__":
    # config: d_hidn=32, n_head=4, d_head=8, dropout=0.0
    B, S, d_hidn, n_head, d_head = 2, 8, 32, 4, 8
    d_proj = n_head * d_head

    key = jax.random.PRNGKey(0)
    keys = jax.random.split(key, 12)

    def init_w(k, shape):
        return jax.random.normal(k, shape, dtype=jnp.float32) * 0.05

    params = {
        "w_q": init_w(keys[0], (d_hidn, d_proj)),
        "b_q": init_w(keys[1], (d_proj,)),
        "w_k": init_w(keys[2], (d_hidn, d_proj)),
        "b_k": init_w(keys[3], (d_proj,)),
        "w_v": init_w(keys[4], (d_hidn, d_proj)),
        "b_v": init_w(keys[5], (d_proj,)),
        "w_o": init_w(keys[6], (d_proj, d_hidn)),
        "b_o": init_w(keys[7], (d_hidn,)),
    }

    Q = jax.random.normal(keys[8], (B, S, d_hidn), dtype=jnp.float32)
    K = jax.random.normal(keys[9], (B, S, d_hidn), dtype=jnp.float32)
    V = jax.random.normal(keys[10], (B, S, d_hidn), dtype=jnp.float32)

    # Padding-style attention mask (True == masked): batch 0 attends to all 8
    # keys, batch 1 has keys 5..7 masked out.  Built as the full (B,Sq,Sk)
    # bool mask, matching the torch module's interface.
    lengths = jnp.array([8, 5])
    key_ids = jnp.arange(S)[None, None, :]                    # (1,1,S)
    attn_mask = key_ids >= lengths[:, None, None]             # (B,1,S)
    attn_mask = jnp.broadcast_to(attn_mask, (B, S, S))        # (B,Sq,Sk) bool

    ref_out, ref_prob = reference(
        params, Q, K, V, attn_mask, n_head=n_head, d_head=d_head)

    # 1) f32 MXU path: bit-for-bit faithful to the torch module (tight tol).
    out32, prob32 = multi_head_attention(
        params, Q, K, V, attn_mask, n_head=n_head, d_head=d_head,
        compute_dtype=jnp.float32)
    jax.block_until_ready((out32, prob32))
    assert out32.shape == (B, S, d_hidn)
    assert prob32.shape == (B, n_head, S, S)
    assert jnp.allclose(out32, ref_out, atol=1e-4, rtol=1e-4)
    assert jnp.allclose(prob32, ref_prob, atol=1e-4, rtol=1e-4)

    # 2) bf16 MXU path (performance default): f32 accumulation, looser tol.
    out16, prob16 = multi_head_attention(
        params, Q, K, V, attn_mask, n_head=n_head, d_head=d_head,
        compute_dtype=jnp.bfloat16)
    jax.block_until_ready((out16, prob16))
    assert out16.shape == (B, S, d_hidn)
    assert prob16.shape == (B, n_head, S, S)
    assert jnp.allclose(out16, ref_out, atol=2e-2, rtol=2e-2)
    assert jnp.allclose(prob16, ref_prob, atol=2e-2, rtol=2e-2)

    print("KERNEL_OK")
</pallas_src>

<mosaic_0001>
module attributes {stable_mosaic.version = 11 : i64} {
  func.func @mha_kernel(%arg0: i32, %arg1: memref<1x8x32xf32, #tpu.memory_space<vmem>>, %arg2: memref<1x8x32xf32, #tpu.memory_space<vmem>>, %arg3: memref<1x8x32xf32, #tpu.memory_space<vmem>>, %arg4: memref<1x8x8xi8, #tpu.memory_space<vmem>>, %arg5: memref<32x32xf32, #tpu.memory_space<vmem>>, %arg6: memref<1x32xf32, #tpu.memory_space<vmem>>, %arg7: memref<32x32xf32, #tpu.memory_space<vmem>>, %arg8: memref<1x32xf32, #tpu.memory_space<vmem>>, %arg9: memref<32x32xf32, #tpu.memory_space<vmem>>, %arg10: memref<1x32xf32, #tpu.memory_space<vmem>>, %arg11: memref<32x32xf32, #tpu.memory_space<vmem>>, %arg12: memref<1x32xf32, #tpu.memory_space<vmem>>, %arg13: memref<1x8x32xf32, #tpu.memory_space<vmem>>, %arg14: memref<1x4x8x8xf32, #tpu.memory_space<vmem>>, %arg15: memref<8x32xf32, #tpu.memory_space<vmem>>) attributes {dimension_semantics = [#tpu.dimension_semantics<parallel>], iteration_bounds = array<i64: 2>, scalar_prefetch = 0 : i64, scratch_operands = 1 : i64, tpu.core_type = #tpu.core_type<tc>, window_params = [{transform_indices = @transform_0, window_bounds = array<i64: 1, 8, 32>}, {transform_indices = @transform_1, window_bounds = array<i64: 1, 8, 32>}, {transform_indices = @transform_2, window_bounds = array<i64: 1, 8, 32>}, {transform_indices = @transform_3, window_bounds = array<i64: 1, 8, 8>}, {pipeline_mode = #tpu.pipeline_mode<synchronous>, transform_indices = @transform_4, window_bounds = array<i64: 32, 32>}, {pipeline_mode = #tpu.pipeline_mode<synchronous>, transform_indices = @transform_5, window_bounds = array<i64: 1, 32>}, {pipeline_mode = #tpu.pipeline_mode<synchronous>, transform_indices = @transform_6, window_bounds = array<i64: 32, 32>}, {pipeline_mode = #tpu.pipeline_mode<synchronous>, transform_indices = @transform_7, window_bounds = array<i64: 1, 32>}, {pipeline_mode = #tpu.pipeline_mode<synchronous>, transform_indices = @transform_8, window_bounds = array<i64: 32, 32>}, {pipeline_mode = #tpu.pipeline_mode<synchronous>, transform_indices = @transform_9, window_bounds = array<i64: 1, 32>}, {pipeline_mode = #tpu.pipeline_mode<synchronous>, transform_indices = @transform_10, window_bounds = array<i64: 32, 32>}, {pipeline_mode = #tpu.pipeline_mode<synchronous>, transform_indices = @transform_11, window_bounds = array<i64: 1, 32>}, {transform_indices = @transform_12, window_bounds = array<i64: 1, 8, 32>}, {transform_indices = @transform_13, window_bounds = array<i64: 1, 4, 8, 8>}]} {
    %c0 = arith.constant 0 : index
    %c0_0 = arith.constant 0 : index
    %c0_1 = arith.constant 0 : index
    %0 = vector.load %arg1[%c0, %c0_0, %c0_1] : memref<1x8x32xf32, #tpu.memory_space<vmem>>, vector<1x8x32xf32>
    %1 = vector.shape_cast %0 : vector<1x8x32xf32> to vector<8x32xf32>
    %c0_2 = arith.constant 0 : index
    %c0_3 = arith.constant 0 : index
    %c0_4 = arith.constant 0 : index
    %2 = vector.load %arg2[%c0_2, %c0_3, %c0_4] : memref<1x8x32xf32, #tpu.memory_space<vmem>>, vector<1x8x32xf32>
    %3 = vector.shape_cast %2 : vector<1x8x32xf32> to vector<8x32xf32>
    %c0_5 = arith.constant 0 : index
    %c0_6 = arith.constant 0 : index
    %c0_7 = arith.constant 0 : index
    %4 = vector.load %arg3[%c0_5, %c0_6, %c0_7] : memref<1x8x32xf32, #tpu.memory_space<vmem>>, vector<1x8x32xf32>
    %5 = vector.shape_cast %4 : vector<1x8x32xf32> to vector<8x32xf32>
    %c0_8 = arith.constant 0 : index
    %c0_9 = arith.constant 0 : index
    %6 = vector.load %arg5[%c0_8, %c0_9] : memref<32x32xf32, #tpu.memory_space<vmem>>, vector<32x32xf32>
    %cst = arith.constant dense<0.000000e+00> : vector<8x32xf32>
    %7 = tpu.matmul %1, %6, %cst {dimension_numbers = #tpu.dot_dimension_numbers<[1], [0], [0], [1], [0, 0, 1, 1], [], []>} : vector<8x32xf32>, vector<32x32xf32>, vector<8x32xf32> -> vector<8x32xf32>
    %c0_10 = arith.constant 0 : index
    %c0_11 = arith.constant 0 : index
    %8 = vector.load %arg6[%c0_10, %c0_11] : memref<1x32xf32, #tpu.memory_space<vmem>>, vector<1x32xf32>
    %9 = vector.broadcast %8 : vector<1x32xf32> to vector<8x32xf32>
    %10 = arith.addf %7, %9 : vector<8x32xf32>
    %c0_12 = arith.constant 0 : index
    %c0_13 = arith.constant 0 : index
    %11 = vector.load %arg7[%c0_12, %c0_13] : memref<32x32xf32, #tpu.memory_space<vmem>>, vector<32x32xf32>
    %cst_14 = arith.constant dense<0.000000e+00> : vector<8x32xf32>
    %12 = tpu.matmul %3, %11, %cst_14 {dimension_numbers = #tpu.dot_dimension_numbers<[1], [0], [0], [1], [0, 0, 1, 1], [], []>} : vector<8x32xf32>, vector<32x32xf32>, vector<8x32xf32> -> vector<8x32xf32>
    %c0_15 = arith.constant 0 : index
    %c0_16 = arith.constant 0 : index
    %13 = vector.load %arg8[%c0_15, %c0_16] : memref<1x32xf32, #tpu.memory_space<vmem>>, vector<1x32xf32>
    %14 = vector.broadcast %13 : vector<1x32xf32> to vector<8x32xf32>
    %15 = arith.addf %12, %14 : vector<8x32xf32>
    %c0_17 = arith.constant 0 : index
    %c0_18 = arith.constant 0 : index
    %16 = vector.load %arg9[%c0_17, %c0_18] : memref<32x32xf32, #tpu.memory_space<vmem>>, vector<32x32xf32>
    %cst_19 = arith.constant dense<0.000000e+00> : vector<8x32xf32>
    %17 = tpu.matmul %5, %16, %cst_19 {dimension_numbers = #tpu.dot_dimension_numbers<[1], [0], [0], [1], [0, 0, 1, 1], [], []>} : vector<8x32xf32>, vector<32x32xf32>, vector<8x32xf32> -> vector<8x32xf32>
    %c0_20 = arith.constant 0 : index
    %c0_21 = arith.constant 0 : index
    %18 = vector.load %arg10[%c0_20, %c0_21] : memref<1x32xf32, #tpu.memory_space<vmem>>, vector<1x32xf32>
    %19 = vector.broadcast %18 : vector<1x32xf32> to vector<8x32xf32>
    %20 = arith.addf %17, %19 : vector<8x32xf32>
    %cst_22 = arith.constant 0.353553385 : f32
    %21 = vector.broadcast %cst_22 : f32 to vector<8x32xf32>
    %22 = arith.mulf %10, %21 : vector<8x32xf32>
    %c0_23 = arith.constant 0 : index
    %c0_24 = arith.constant 0 : index
    %c0_25 = arith.constant 0 : index
    %23 = vector.load %arg4[%c0_23, %c0_24, %c0_25] : memref<1x8x8xi8, #tpu.memory_space<vmem>>, vector<1x8x8xi8>
    %24 = vector.shape_cast %23 : vector<1x8x8xi8> to vector<8x8xi8>
    %c0_i8 = arith.constant 0 : i8
    %25 = vector.broadcast %c0_i8 : i8 to vector<8x8xi8>
    %26 = arith.cmpi ne, %24, %25 : vector<8x8xi8>
    %27 = vector.extract_strided_slice %22 {offsets = [0, 0], sizes = [8, 8], strides = [1, 1]} : vector<8x32xf32> to vector<8x8xf32>
    %28 = vector.extract_strided_slice %15 {offsets = [0, 0], sizes = [8, 8], strides = [1, 1]} : vector<8x32xf32> to vector<8x8xf32>
    %29 = vector.extract_strided_slice %20 {offsets = [0, 0], sizes = [8, 8], strides = [1, 1]} : vector<8x32xf32> to vector<8x8xf32>
    %cst_26 = arith.constant dense<0.000000e+00> : vector<8x8xf32>
    %30 = tpu.matmul %27, %28, %cst_26 {dimension_numbers = #tpu.dot_dimension_numbers<[1], [1], [0], [0], [0, 0, 1, 0], [], []>} : vector<8x8xf32>, vector<8x8xf32>, vector<8x8xf32> -> vector<8x8xf32>
    %cst_27 = arith.constant -1.000000e+09 : f32
    %31 = vector.broadcast %cst_27 : f32 to vector<8x8xf32>
    %32 = arith.select %26, %31, %30 : vector<8x8xi1>, vector<8x8xf32>
    %cst_28 = arith.constant dense<0xFF800000> : vector<8xf32>
    %33 = vector.multi_reduction <maximumf>, %32, %cst_28 [1] : vector<8x8xf32> to vector<8xf32>
    %34 = vector.shape_cast %33 : vector<8xf32> to vector<8x1xf32>
    %35 = vector.broadcast %34 : vector<8x1xf32> to vector<8x8xf32>
    %36 = arith.subf %32, %35 : vector<8x8xf32>
    %37 = math.exp %36 : vector<8x8xf32>
    %cst_29 = arith.constant dense<0.000000e+00> : vector<8xf32>
    %38 = vector.multi_reduction <add>, %37, %cst_29 [1] : vector<8x8xf32> to vector<8xf32>
    %39 = vector.shape_cast %38 : vector<8xf32> to vector<8x1xf32>
    %40 = tpu.reciprocal %39 {approx = true} : vector<8x1xf32> -> vector<8x1xf32>
    %41 = arith.mulf %39, %40 : vector<8x1xf32>
    %cst_30 = arith.constant 2.000000e+00 : f32
    %42 = vector.broadcast %cst_30 : f32 to vector<8x1xf32>
    %43 = arith.subf %42, %41 : vector<8x1xf32>
    %44 = arith.mulf %40, %43 : vector<8x1xf32>
    %45 = vector.broadcast %44 : vector<8x1xf32> to vector<8x8xf32>
    %46 = arith.mulf %37, %45 : vector<8x8xf32>
    %c0_31 = arith.constant 0 : index
    %c0_32 = arith.constant 0 : index
    %c0_33 = arith.constant 0 : index
    %c0_34 = arith.constant 0 : index
    %47 = vector.load %arg14[%c0_31, %c0_32, %c0_33, %c0_34] : memref<1x4x8x8xf32, #tpu.memory_space<vmem>>, vector<1x1x8x8xf32>
    %48 = vector.shape_cast %47 : vector<1x1x8x8xf32> to vector<8x8xf32>
    %49 = vector.shape_cast %46 : vector<8x8xf32> to vector<1x1x8x8xf32>
    tpu.vector_store %arg14[%c0_31, %c0_32, %c0_33, %c0_34], %49 {strides = array<i32>} : memref<1x4x8x8xf32, #tpu.memory_space<vmem>>, vector<1x1x8x8xf32>,
    %cst_35 = arith.constant dense<0.000000e+00> : vector<8x8xf32>
    %50 = tpu.matmul %46, %29, %cst_35 {dimension_numbers = #tpu.dot_dimension_numbers<[1], [0], [0], [1], [0, 0, 1, 1], [], []>} : vector<8x8xf32>, vector<8x8xf32>, vector<8x8xf32> -> vector<8x8xf32>
    %c0_36 = arith.constant 0 : index
    %c0_37 = arith.constant 0 : index
    %51 = vector.load %arg15[%c0_36, %c0_37] : memref<8x32xf32, #tpu.memory_space<vmem>>, vector<8x8xf32>
    tpu.vector_store %arg15[%c0_36, %c0_37], %50 {strides = array<i32>} : memref<8x32xf32, #tpu.memory_space<vmem>>, vector<8x8xf32>,
    %52 = vector.extract_strided_slice %22 {offsets = [0, 8], sizes = [8, 8], strides = [1, 1]} : vector<8x32xf32> to vector<8x8xf32>
    %53 = vector.extract_strided_slice %15 {offsets = [0, 8], sizes = [8, 8], strides = [1, 1]} : vector<8x32xf32> to vector<8x8xf32>
    %54 = vector.extract_strided_slice %20 {offsets = [0, 8], sizes = [8, 8], strides = [1, 1]} : vector<8x32xf32> to vector<8x8xf32>
    %cst_38 = arith.constant dense<0.000000e+00> : vector<8x8xf32>
    %55 = tpu.matmul %52, %53, %cst_38 {dimension_numbers = #tpu.dot_dimension_numbers<[1], [1], [0], [0], [0, 0, 1, 0], [], []>} : vector<8x8xf32>, vector<8x8xf32>, vector<8x8xf32> -> vector<8x8xf32>
    %cst_39 = arith.constant -1.000000e+09 : f32
    %56 = vector.broadcast %cst_39 : f32 to vector<8x8xf32>
    %57 = arith.select %26, %56, %55 : vector<8x8xi1>, vector<8x8xf32>
    %cst_40 = arith.constant dense<0xFF800000> : vector<8xf32>
    %58 = vector.multi_reduction <maximumf>, %57, %cst_40 [1] : vector<8x8xf32> to vector<8xf32>
    %59 = vector.shape_cast %58 : vector<8xf32> to vector<8x1xf32>
    %60 = vector.broadcast %59 : vector<8x1xf32> to vector<8x8xf32>
    %61 = arith.subf %57, %60 : vector<8x8xf32>
    %62 = math.exp %61 : vector<8x8xf32>
    %cst_41 = arith.constant dense<0.000000e+00> : vector<8xf32>
    %63 = vector.multi_reduction <add>, %62, %cst_41 [1] : vector<8x8xf32> to vector<8xf32>
    %64 = vector.shape_cast %63 : vector<8xf32> to vector<8x1xf32>
    %65 = tpu.reciprocal %64 {approx = true} : vector<8x1xf32> -> vector<8x1xf32>
    %66 = arith.mulf %64, %65 : vector<8x1xf32>
    %cst_42 = arith.constant 2.000000e+00 : f32
    %67 = vector.broadcast %cst_42 : f32 to vector<8x1xf32>
    %68 = arith.subf %67, %66 : vector<8x1xf32>
    %69 = arith.mulf %65, %68 : vector<8x1xf32>
    %70 = vector.broadcast %69 : vector<8x1xf32> to vector<8x8xf32>
    %71 = arith.mulf %62, %70 : vector<8x8xf32>
    %c0_43 = arith.constant 0 : index
    %c1 = arith.constant 1 : index
    %c0_44 = arith.constant 0 : index
    %c0_45 = arith.constant 0 : index
    %72 = vector.load %arg14[%c0_43, %c1, %c0_44, %c0_45] : memref<1x4x8x8xf32, #tpu.memory_space<vmem>>, vector<1x1x8x8xf32>
    %73 = vector.shape_cast %72 : vector<1x1x8x8xf32> to vector<8x8xf32>
    %74 = vector.shape_cast %71 : vector<8x8xf32> to vector<1x1x8x8xf32>
    tpu.vector_store %arg14[%c0_43, %c1, %c0_44, %c0_45], %74 {strides = array<i32>} : memref<1x4x8x8xf32, #tpu.memory_space<vmem>>, vector<1x1x8x8xf32>,
    %cst_46 = arith.constant dense<0.000000e+00> : vector<8x8xf32>
    %75 = tpu.matmul %71, %54, %cst_46 {dimension_numbers = #tpu.dot_dimension_numbers<[1], [0], [0], [1], [0, 0, 1, 1], [], []>} : vector<8x8xf32>, vector<8x8xf32>, vector<8x8xf32> -> vector<8x8xf32>
    %c0_47 = arith.constant 0 : index
    %c8 = arith.constant 8 : index
    %76 = vector.load %arg15[%c0_47, %c8] : memref<8x32xf32, #tpu.memory_space<vmem>>, vector<8x8xf32>
    tpu.vector_store %arg15[%c0_47, %c8], %75 {strides = array<i32>} : memref<8x32xf32, #tpu.memory_space<vmem>>, vector<8x8xf32>,
    %77 = vector.extract_strided_slice %22 {offsets = [0, 16], sizes = [8, 8], strides = [1, 1]} : vector<8x32xf32> to vector<8x8xf32>
    %78 = vector.extract_strided_slice %15 {offsets = [0, 16], sizes = [8, 8], strides = [1, 1]} : vector<8x32xf32> to vector<8x8xf32>
    %79 = vector.extract_strided_slice %20 {offsets = [0, 16], sizes = [8, 8], strides = [1, 1]} : vector<8x32xf32> to vector<8x8xf32>
    %cst_48 = arith.constant dense<0.000000e+00> : vector<8x8xf32>
    %80 = tpu.matmul %77, %78, %cst_48 {dimension_numbers = #tpu.dot_dimension_numbers<[1], [1], [0], [0], [0, 0, 1, 0], [], []>} : vector<8x8xf32>, vector<8x8xf32>, vector<8x8xf32> -> vector<8x8xf32>
    %cst_49 = arith.constant -1.000000e+09 : f32
    %81 = vector.broadcast %cst_49 : f32 to vector<8x8xf32>
    %82 = arith.select %26, %81, %80 : vector<8x8xi1>, vector<8x8xf32>
    %cst_50 = arith.constant dense<0xFF800000> : vector<8xf32>
    %83 = vector.multi_reduction <maximumf>, %82, %cst_50 [1] : vector<8x8xf32> to vector<8xf32>
    %84 = vector.shape_cast %83 : vector<8xf32> to vector<8x1xf32>
    %85 = vector.broadcast %84 : vector<8x1xf32> to vector<8x8xf32>
    %86 = arith.subf %82, %85 : vector<8x8xf32>
    %87 = math.exp %86 : vector<8x8xf32>
    %cst_51 = arith.constant dense<0.000000e+00> : vector<8xf32>
    %88 = vector.multi_reduction <add>, %87, %cst_51 [1] : vector<8x8xf32> to vector<8xf32>
    %89 = vector.shape_cast %88 : vector<8xf32> to vector<8x1xf32>
    %90 = tpu.reciprocal %89 {approx = true} : vector<8x1xf32> -> vector<8x1xf32>
    %91 = arith.mulf %89, %90 : vector<8x1xf32>
    %cst_52 = arith.constant 2.000000e+00 : f32
    %92 = vector.broadcast %cst_52 : f32 to vector<8x1xf32>
    %93 = arith.subf %92, %91 : vector<8x1xf32>
    %94 = arith.mulf %90, %93 : vector<8x1xf32>
    %95 = vector.broadcast %94 : vector<8x1xf32> to vector<8x8xf32>
    %96 = arith.mulf %87, %95 : vector<8x8xf32>
    %c0_53 = arith.constant 0 : index
    %c2 = arith.constant 2 : index
    %c0_54 = arith.constant 0 : index
    %c0_55 = arith.constant 0 : index
    %97 = vector.load %arg14[%c0_53, %c2, %c0_54, %c0_55] : memref<1x4x8x8xf32, #tpu.memory_space<vmem>>, vector<1x1x8x8xf32>
    %98 = vector.shape_cast %97 : vector<1x1x8x8xf32> to vector<8x8xf32>
    %99 = vector.shape_cast %96 : vector<8x8xf32> to vector<1x1x8x8xf32>
    tpu.vector_store %arg14[%c0_53, %c2, %c0_54, %c0_55], %99 {strides = array<i32>} : memref<1x4x8x8xf32, #tpu.memory_space<vmem>>, vector<1x1x8x8xf32>,
    %cst_56 = arith.constant dense<0.000000e+00> : vector<8x8xf32>
    %100 = tpu.matmul %96, %79, %cst_56 {dimension_numbers = #tpu.dot_dimension_numbers<[1], [0], [0], [1], [0, 0, 1, 1], [], []>} : vector<8x8xf32>, vector<8x8xf32>, vector<8x8xf32> -> vector<8x8xf32>
    %c0_57 = arith.constant 0 : index
    %c16 = arith.constant 16 : index
    %101 = vector.load %arg15[%c0_57, %c16] : memref<8x32xf32, #tpu.memory_space<vmem>>, vector<8x8xf32>
    tpu.vector_store %arg15[%c0_57, %c16], %100 {strides = array<i32>} : memref<8x32xf32, #tpu.memory_space<vmem>>, vector<8x8xf32>,
    %102 = vector.extract_strided_slice %22 {offsets = [0, 24], sizes = [8, 8], strides = [1, 1]} : vector<8x32xf32> to vector<8x8xf32>
    %103 = vector.extract_strided_slice %15 {offsets = [0, 24], sizes = [8, 8], strides = [1, 1]} : vector<8x32xf32> to vector<8x8xf32>
    %104 = vector.extract_strided_slice %20 {offsets = [0, 24], sizes = [8, 8], strides = [1, 1]} : vector<8x32xf32> to vector<8x8xf32>
    %cst_58 = arith.constant dense<0.000000e+00> : vector<8x8xf32>
    %105 = tpu.matmul %102, %103, %cst_58 {dimension_numbers = #tpu.dot_dimension_numbers<[1], [1], [0], [0], [0, 0, 1, 0], [], []>} : vector<8x8xf32>, vector<8x8xf32>, vector<8x8xf32> -> vector<8x8xf32>
    %cst_59 = arith.constant -1.000000e+09 : f32
    %106 = vector.broadcast %cst_59 : f32 to vector<8x8xf32>
    %107 = arith.select %26, %106, %105 : vector<8x8xi1>, vector<8x8xf32>
    %cst_60 = arith.constant dense<0xFF800000> : vector<8xf32>
    %108 = vector.multi_reduction <maximumf>, %107, %cst_60 [1] : vector<8x8xf32> to vector<8xf32>
    %109 = vector.shape_cast %108 : vector<8xf32> to vector<8x1xf32>
    %110 = vector.broadcast %109 : vector<8x1xf32> to vector<8x8xf32>
    %111 = arith.subf %107, %110 : vector<8x8xf32>
    %112 = math.exp %111 : vector<8x8xf32>
    %cst_61 = arith.constant dense<0.000000e+00> : vector<8xf32>
    %113 = vector.multi_reduction <add>, %112, %cst_61 [1] : vector<8x8xf32> to vector<8xf32>
    %114 = vector.shape_cast %113 : vector<8xf32> to vector<8x1xf32>
    %115 = tpu.reciprocal %114 {approx = true} : vector<8x1xf32> -> vector<8x1xf32>
    %116 = arith.mulf %114, %115 : vector<8x1xf32>
    %cst_62 = arith.constant 2.000000e+00 : f32
    %117 = vector.broadcast %cst_62 : f32 to vector<8x1xf32>
    %118 = arith.subf %117, %116 : vector<8x1xf32>
    %119 = arith.mulf %115, %118 : vector<8x1xf32>
    %120 = vector.broadcast %119 : vector<8x1xf32> to vector<8x8xf32>
    %121 = arith.mulf %112, %120 : vector<8x8xf32>
    %c0_63 = arith.constant 0 : index
    %c3 = arith.constant 3 : index
    %c0_64 = arith.constant 0 : index
    %c0_65 = arith.constant 0 : index
    %122 = vector.load %arg14[%c0_63, %c3, %c0_64, %c0_65] : memref<1x4x8x8xf32, #tpu.memory_space<vmem>>, vector<1x1x8x8xf32>
    %123 = vector.shape_cast %122 : vector<1x1x8x8xf32> to vector<8x8xf32>
    %124 = vector.shape_cast %121 : vector<8x8xf32> to vector<1x1x8x8xf32>
    tpu.vector_store %arg14[%c0_63, %c3, %c0_64, %c0_65], %124 {strides = array<i32>} : memref<1x4x8x8xf32, #tpu.memory_space<vmem>>, vector<1x1x8x8xf32>,
    %cst_66 = arith.constant dense<0.000000e+00> : vector<8x8xf32>
    %125 = tpu.matmul %121, %104, %cst_66 {dimension_numbers = #tpu.dot_dimension_numbers<[1], [0], [0], [1], [0, 0, 1, 1], [], []>} : vector<8x8xf32>, vector<8x8xf32>, vector<8x8xf32> -> vector<8x8xf32>
    %c0_67 = arith.constant 0 : index
    %c24 = arith.constant 24 : index
    %126 = vector.load %arg15[%c0_67, %c24] : memref<8x32xf32, #tpu.memory_space<vmem>>, vector<8x8xf32>
    tpu.vector_store %arg15[%c0_67, %c24], %125 {strides = array<i32>} : memref<8x32xf32, #tpu.memory_space<vmem>>, vector<8x8xf32>,
    %c0_68 = arith.constant 0 : index
    %c0_69 = arith.constant 0 : index
    %127 = vector.load %arg15[%c0_68, %c0_69] : memref<8x32xf32, #tpu.memory_space<vmem>>, vector<8x32xf32>
    %c0_70 = arith.constant 0 : index
    %c0_71 = arith.constant 0 : index
    %128 = vector.load %arg11[%c0_70, %c0_71] : memref<32x32xf32, #tpu.memory_space<vmem>>, vector<32x32xf32>
    %cst_72 = arith.constant dense<0.000000e+00> : vector<8x32xf32>
    %129 = tpu.matmul %127, %128, %cst_72 {dimension_numbers = #tpu.dot_dimension_numbers<[1], [0], [0], [1], [0, 0, 1, 1], [], []>} : vector<8x32xf32>, vector<32x32xf32>, vector<8x32xf32> -> vector<8x32xf32>
    %c0_73 = arith.constant 0 : index
    %c0_74 = arith.constant 0 : index
    %130 = vector.load %arg12[%c0_73, %c0_74] : memref<1x32xf32, #tpu.memory_space<vmem>>, vector<1x32xf32>
    %131 = vector.broadcast %130 : vector<1x32xf32> to vector<8x32xf32>
    %132 = arith.addf %129, %131 : vector<8x32xf32>
    %c0_75 = arith.constant 0 : index
    %c0_76 = arith.constant 0 : index
    %c0_77 = arith.constant 0 : index
    %133 = vector.load %arg13[%c0_75, %c0_76, %c0_77] : memref<1x8x32xf32, #tpu.memory_space<vmem>>, vector<1x8x32xf32>
    %134 = vector.shape_cast %133 : vector<1x8x32xf32> to vector<8x32xf32>
    %135 = vector.shape_cast %132 : vector<8x32xf32> to vector<1x8x32xf32>
    tpu.vector_store %arg13[%c0_75, %c0_76, %c0_77], %135 {strides = array<i32>} : memref<1x8x32xf32, #tpu.memory_space<vmem>>, vector<1x8x32xf32>,
    return
  }
  func.func @transform_0(%arg0: i32) -> (i32, i32, i32) {
    %c0_i32 = arith.constant 0 : i32
    %c0_i32_0 = arith.constant 0 : i32
    %c0_i32_1 = arith.constant 0 : i32
    return %arg0, %c0_i32, %c0_i32_0 : i32, i32, i32
  }
  func.func @transform_1(%arg0: i32) -> (i32, i32, i32) {
    %c0_i32 = arith.constant 0 : i32
    %c0_i32_0 = arith.constant 0 : i32
    %c0_i32_1 = arith.constant 0 : i32
    return %arg0, %c0_i32, %c0_i32_0 : i32, i32, i32
  }
  func.func @transform_2(%arg0: i32) -> (i32, i32, i32) {
    %c0_i32 = arith.constant 0 : i32
    %c0_i32_0 = arith.constant 0 : i32
    %c0_i32_1 = arith.constant 0 : i32
    return %arg0, %c0_i32, %c0_i32_0 : i32, i32, i32
  }
  func.func @transform_3(%arg0: i32) -> (i32, i32, i32) {
    %c0_i32 = arith.constant 0 : i32
    %c0_i32_0 = arith.constant 0 : i32
    %c0_i32_1 = arith.constant 0 : i32
    return %arg0, %c0_i32, %c0_i32_0 : i32, i32, i32
  }
  func.func @transform_4(%arg0: i32) -> (i32, i32) {
    %c0_i32 = arith.constant 0 : i32
    %c0_i32_0 = arith.constant 0 : i32
    %c0_i32_1 = arith.constant 0 : i32
    return %c0_i32, %c0_i32_0 : i32, i32
  }
  func.func @transform_5(%arg0: i32) -> (i32, i32) {
    %c0_i32 = arith.constant 0 : i32
    %c0_i32_0 = arith.constant 0 : i32
    %c0_i32_1 = arith.constant 0 : i32
    return %c0_i32, %c0_i32_0 : i32, i32
  }
  func.func @transform_6(%arg0: i32) -> (i32, i32) {
    %c0_i32 = arith.constant 0 : i32
    %c0_i32_0 = arith.constant 0 : i32
    %c0_i32_1 = arith.constant 0 : i32
    return %c0_i32, %c0_i32_0 : i32, i32
  }
  func.func @transform_7(%arg0: i32) -> (i32, i32) {
    %c0_i32 = arith.constant 0 : i32
    %c0_i32_0 = arith.constant 0 : i32
    %c0_i32_1 = arith.constant 0 : i32
    return %c0_i32, %c0_i32_0 : i32, i32
  }
  func.func @transform_8(%arg0: i32) -> (i32, i32) {
    %c0_i32 = arith.constant 0 : i32
    %c0_i32_0 = arith.constant 0 : i32
    %c0_i32_1 = arith.constant 0 : i32
    return %c0_i32, %c0_i32_0 : i32, i32
  }
  func.func @transform_9(%arg0: i32) -> (i32, i32) {
    %c0_i32 = arith.constant 0 : i32
    %c0_i32_0 = arith.constant 0 : i32
    %c0_i32_1 = arith.constant 0 : i32
    return %c0_i32, %c0_i32_0 : i32, i32
  }
  func.func @transform_10(%arg0: i32) -> (i32, i32) {
    %c0_i32 = arith.constant 0 : i32
    %c0_i32_0 = arith.constant 0 : i32
    %c0_i32_1 = arith.constant 0 : i32
    return %c0_i32, %c0_i32_0 : i32, i32
  }
  func.func @transform_11(%arg0: i32) -> (i32, i32) {
    %c0_i32 = arith.constant 0 : i32
    %c0_i32_0 = arith.constant 0 : i32
    %c0_i32_1 = arith.constant 0 : i32
    return %c0_i32, %c0_i32_0 : i32, i32
  }
  func.func @transform_12(%arg0: i32) -> (i32, i32, i32) {
    %c0_i32 = arith.constant 0 : i32
    %c0_i32_0 = arith.constant 0 : i32
    %c0_i32_1 = arith.constant 0 : i32
    return %arg0, %c0_i32, %c0_i32_0 : i32, i32, i32
  }
  func.func @transform_13(%arg0: i32) -> (i32, i32, i32, i32) {
    %c0_i32 = arith.constant 0 : i32
    %c0_i32_0 = arith.constant 0 : i32
    %c0_i32_1 = arith.constant 0 : i32
    %c0_i32_2 = arith.constant 0 : i32
    return %arg0, %c0_i32, %c0_i32_0, %c0_i32_1 : i32, i32, i32, i32
  }
}

</mosaic_0001>

<bundles_post_ra>
// kernel: tpu_custom_call.1
= control target key start
LH: loop header
LB: loop body
LE: loop exit
PB: predicated region body
PF: predicated region fallthrough
CT: control target
= control target key end

     0   :  { %s3246_s0 = inlined_call_operand.hbm [shape: f32[2,8,32], index: 0, kind: input, shape index: {}]   ;;  %s3247_s1 = inlined_call_operand.hbm [shape: f32[2,8,32], index: 1, kind: input, shape index: {}]   ;;  %s3248_s2 = inlined_call_operand.hbm [shape: f32[2,8,32], index: 2, kind: input, shape index: {}]   ;;  %s3249_s3 = inlined_call_operand.vmem [shape: s8[2,8,8], index: 3, kind: input, shape index: {}]   ;;  %s3250_s4 = inlined_call_operand.hbm [shape: f32[32,32], index: 4, kind: input, shape index: {}]   ;;  %s3251_s5 = inlined_call_operand.vmem [shape: f32[1,32], index: 5, kind: input, shape index: {}]   ;;  %s3252_s6 = inlined_call_operand.hbm [shape: f32[32,32], index: 6, kind: input, shape index: {}]   ;;  %s3253_s7 = inlined_call_operand.hbm [shape: f32[1,32], index: 7, kind: input, shape index: {}]   ;;  %s3254_s8 = inlined_call_operand.hbm [shape: f32[32,32], index: 8, kind: input, shape index: {}]   ;;  %s3255_s9 = inlined_call_operand.hbm [shape: f32[1,32], index: 9, kind: input, shape index: {}]   ;;  %s3256_s10 = inlined_call_operand.vmem [shape: f32[32,32], index: 10, kind: input, shape index: {}]   ;;  %s3257_s11 = inlined_call_operand.vmem [shape: f32[1,32], index: 11, kind: input, shape index: {}]   ;;  %s3258_s12 = inlined_call_operand.hbm [shape: f32[2,8,32], index: 12, kind: output, shape index: {0}]   ;;  %s3259_s13 = inlined_call_operand.hbm [shape: f32[2,4,8,8], index: 13, kind: output, shape index: {1}]  }
   0x1   :  { %3289 = sst [smem:[#allocation34_spill]] %s3247_s1 }
   0x2   :  { %3290 = sst [smem:[#allocation35_spill]] %s3249_s3 }
   0x3   :  { %3291 = sst [smem:[#allocation36_spill]] %s3250_s4 }
   0x4   :  { %3292 = sst [smem:[#allocation37_spill]] %s3251_s5 }
   0x5   :  { %3293 = sst [smem:[#allocation38_spill]] %s3253_s7 }
   0x6   :  { %3294 = sst [smem:[#allocation39_spill]] %s3256_s10 }
   0x7   :  { %3295 = sst [smem:[#allocation40_spill]] %s3257_s11 }
   0x8   :  { %3296 = sst [smem:[#allocation41_spill]] %s3258_s12 }
   0x9   :  { %3297 = sst [smem:[#allocation42_spill]] %s3259_s13 }
   0xa   :  { %19 = vsyncpa [#allocation4], 0 }
   0xb   :  { %21 = vsyncpa [#allocation4 + $0x1], 0 }
   0xc   :  { %22 = vsyncpa [#allocation7], 0 }
   0xd   :  { %24 = vsyncpa [#allocation7 + $0x1], 0 }
   0xe   :  { %25 = vsyncpa [#allocation10], 0 }
   0xf   :  { %26 = vsyncpa [#allocation13], 0 }
  0x10   :  { %27 = vsyncpa [#allocation16], 0 }
  0x11   :  { %28 = vsyncpa [#allocation5], 0 }
  0x12   :  { %30 = vsyncpa [#allocation5 + $0x1], 0 }
  0x13   :  { %31 = vsyncpa [#allocation19], 0 }
  0x14   :  { %33 = vsyncpa [#allocation19 + $0x1], 0  ;;  %s2694_s25 = smov 0   ;;  %s2696_s26 = smov 0  }
  0x15   :  { %s2698_s27 = smov 0   ;;  %s2700_s28 = smov 0  }
  0x16 LB: > { %3298 = sst [smem:[#allocation27_spill]] %s2587_s25  ;;  %s2601_s29 = smov [#allocation9]   ;;  %s2599_s28 = sphi %s2700_s28, %s3349_s28   ;;  %s2595_s27 = sphi %s2698_s27, %s3353_s27   ;;  %s2591_s26 = sphi %s2696_s26, %s3352_s26   ;;  %s2587_s25 = sphi %s2694_s25, %s3351_s25  }
  0x17   : > { %3299 = sst [smem:[#allocation28_spill]] %s2599_s28  ;;  %s380_s30 = sshll.u32 %s2601_s29, 4  ;;  %s2720_s30 = int_to_ptr.vmem [resolvable:$true] %s380_s30 }
  0x18   : > { %s2715_s14 = sadd.s32 4294967295, %s2599_s28   ;;  %p1914_p0 = scmp.ge.s32.totalorder %s2599_s28, 1 }
  0x19   : > { %3300 = sst [smem:[#allocation29_spill]] %s2715_s14  ;;  %p3274_p1 = scmp.eq.s32.totalorder %s2715_s14, 0 }
  0x1a   : > { %p368_p2 = scmp.lt.s32.totalorder %s2599_s28, 3  ;;  %s2602_s16 = smov [#allocation12]  }
  0x1b   : > { %s410_s17 = sshll.u32 %s2602_s16, 4  ;;  %s3303_s4 = sld [smem:[#allocation36_spill]]  ;;  %s2735_s17 = int_to_ptr.vmem [resolvable:$true] %s410_s17 }
  0x1c   : > { %p2722_p3 = pnand %p1914_p0, %p368_p2 }
  0x1e   : > { %s3301_s15 = scalar_select %p2722_p3, 1, 0 }
  0x1f   : > { %p2144_p5 = pneg %p2722_p3 }
  0x21   : > { %p2731_p6 = pnand %p2144_p5, %p3274_p1  ;;  %s2255_s21 = scalar_lea.hbm %s3303_s4, 512 }
  0x22   : > { %p2256_p7 = scmp.ne.s32.totalorder %s3303_s4, %s2255_s21  ;;  %p2262_p11 = scmp.lt.u32.totalorder %s2255_s21, %s3303_s4 }
  0x23   : > { %s3302_s18 = scalar_select %p2731_p6, 1, 0 }
  0x24   : > { %p2745_p8 = pneg %p2731_p6 }
  0x26   : > { %s3304_s24 = scalar_select %p2745_p8, 1, 0 }
  0x27   : > { %p2258_p9 = pnand %p2745_p8, %p2256_p7 }
  0x29   : > { %p2259_p10 = pneg %p2258_p9 }
  0x2b   : > { %p2264_p12 = pnand %p2262_p11, %p2259_p10 }
  0x2d   : > { %2267 = shalt.err (!%p2264_p12)
}
  0x2e   : > { %s2268_s19 = scalar_lea.vmem %s2720_s30, 512  ;;  %p2276_p5 = scmp.lt.s32.totalorder %s2720_s30, %s2720_s30 }
  0x2f   : > { %p2269_p13 = scmp.ne.s32.totalorder %s2720_s30, %s2268_s19  ;;  %p2277_p4 = scmp.lt.s32.totalorder %s2268_s19, %s2268_s19 }
  0x31   : > { %p2271_p0 = pnand %p2269_p13, %p2745_p8  ;;  %p2278_p7 = por %p2277_p4, %p2276_p5 }
  0x33   : > { %p2272_p2 = pneg %p2271_p0 }
  0x35   : > { %p2279_p9 = pnand %p2278_p7, %p2272_p2 }
  0x37   : > { %2282 = shalt.err (!%p2279_p9)
}
  0x38   : > { %s3264_s20 = smov 128   ;;  %s3266_s21 = smov 8  }
  0x39   : > { %2147 = dma.hbm_to_vmem [thread:$0]  (!%p2731_p6), %s3303_s4, 512, %s2720_s30, [#allocation10], %s3264_s20, %s3264_s20, %s3266_s21  }
  0x3a   : > { %s3305_s7 = sld [smem:[#allocation38_spill]] }
  0x40   : > { %s2283_s19 = scalar_lea.hbm %s3305_s7, 16 }
  0x41   : > { %p2284_p4 = scmp.ne.s32.totalorder %s3305_s7, %s2283_s19  ;;  %p2290_p12 = scmp.lt.u32.totalorder %s2283_s19, %s3305_s7 }
  0x43   : > { %p2286_p10 = pnand %p2284_p4, %p2745_p8 }
  0x45   : > { %p2287_p11 = pneg %p2286_p10 }
  0x47   : > { %p2292_p13 = pnand %p2290_p12, %p2287_p11 }
  0x49   : > { %2295 = shalt.err (!%p2292_p13)
}
  0x4a   : > { %s2296_s30 = scalar_lea.vmem %s2735_s17, 16  ;;  %s2303_s11 = scalar_lea.vmem %s2735_s17, 32 }
  0x4b   : > { %p2297_p0 = scmp.ne.s32.totalorder %s2735_s17, %s2296_s30  ;;  %p2304_p7 = scmp.lt.s32.totalorder %s2735_s17, %s2735_s17 }
  0x4c   : > { %p2305_p9 = scmp.lt.s32.totalorder %s2303_s11, %s2296_s30 }
  0x4d   : > { %p2299_p2 = pnand %p2297_p0, %p2745_p8 }
  0x4e   : > { %p2306_p4 = por %p2305_p9, %p2304_p7 }
  0x4f   : > { %p2300_p5 = pneg %p2299_p2 }
  0x51   : > { %p2307_p10 = pnand %p2306_p4, %p2300_p5 }
  0x53   : > { %2310 = shalt.err (!%p2307_p10)
}
  0x54   : > { %2153 = dma.hbm_to_vmem [thread:$0]  (!%p2731_p6), %s3305_s7, 16, %s2735_s17, [#allocation13]  }
  0x55   : > { %s1913_s13 = sadd.s32 4294967294, %s2599_s28   ;;  %s2795_s22 = sadd.s32 1, %s2599_s28  }
  0x56   : > { %3306 = sst [smem:[#allocation30_spill]] %s2795_s22  ;;  %s43_s23 = ssub.s32 %s2599_s28, %s2795_s22 }
  0x57   : > { %s46_s29 = sadd.s32 1, %s2595_s27  ;;  %p44_p11 = scmp.eq.s32.totalorder %s43_s23, 0 }
  0x58   : > { %p53_p12 = scmp.ne.s32.totalorder %s2595_s27, %s2591_s26  ;;  %p54_p13 = scmp.eq.s32.totalorder %s2599_s28, 0 }
  0x59   : > { %p59_p0 = scmp.ne.s32.totalorder %s2591_s26, %s2587_s25  ;;  %p329_p7 = scmp.eq.s32.totalorder %s2715_s14, 1 }
  0x5a   : > { %s2806_s16 = scalar_select %p44_p11, %s2595_s27, %s46_s29  }
  0x5b   : > { %p55_p2 = por %p54_p13, %p53_p12  ;;  %p2810_p5 = por %p3274_p1, %p59_p0 }
  0x5c   : > { %3307 = sst [smem:[#allocation31_spill]] %s2806_s16  ;;  %p335_p9 = scmp.eq.s32.totalorder %s1913_s13, 1 }
  0x5d   : > { %s3308_s19 = scalar_select %p2810_p5, 1, 0 }
  0x5e   : > { %p2182_p4 = scmp.lt.s32.totalorder %s2599_s28, 2  ;;  %s3268_s17 = sand.u32 1, %s2595_s27  }
  0x5f   : > { %p2817_p10 = por %p329_p7, %p53_p12  ;;  %p2821_p3 = por %p335_p9, %p59_p0 }
  0x60   : > { %s2827_s10 = sshll.u32 %s3268_s17, 3  ;;  %s2830_s12 = sshll.u32 %s2599_s28, 7 }
  0x61   : > { %s3309_s30 = scalar_select %p2817_p10, 1, 0 }
  0x62   : > { %s3311_s11 = scalar_select %p2821_p3, 1, 0 }
  0x63   : > { %3310 = sst [smem:[#allocation32_spill]] %s3309_s30  ;;  %p2832_p11 = pnand %p2182_p4, %p55_p2 }
  0x64   : > { %3312 = sst [smem:[#allocation33_spill]] %s3311_s11  ;;  %s469_s13 = sand.u32 1, %s2599_s28  }
  0x65   : > { %s3313_s23 = scalar_select %p2832_p11, 1, 0 }
  0x66   : > { %s3314_s1 = sld [smem:[#allocation34_spill]]  ;;  %s473_s17 = scalar_lea.vmem [#allocation6], %s2827_s10 }
  0x67   : > { %s480_s4 = sshll.u32 %s473_s17, 4  ;;  %s2605_s7 = smov [#allocation11]   ;;  %s2844_s4 = int_to_ptr.vmem [resolvable:$true] %s480_s4 }
  0x68   : > { %s2846_s16 = sshll.u32 %s2605_s7, 4  ;;  %s2848_s22 = scalar_lea.sflag [#allocation7], %s469_s13  ;;  %s397_s16 = int_to_ptr.vmem [resolvable:$true] %s2846_s16 }
  0x69   : > { %p2854_p13 = pneg %p2832_p11 }
  0x6b   : > { %s3315_s20 = scalar_select %p2854_p13, 1, 0 }
  0x6c   : > { %s2841_s21 = scalar_lea.hbm %s3314_s1, %s2830_s12  ;;  %s2316_s28 = scalar_lea.hbm %s3314_s1, 256 }
  0x6d   : > { %s2311_s11 = scalar_lea.hbm %s2841_s21, 128  ;;  %p2317_p7 = scmp.lt.u32.totalorder %s2841_s21, %s3314_s1 }
  0x6e   : > { %p2312_p12 = scmp.ne.s32.totalorder %s2841_s21, %s2311_s11  ;;  %p2318_p9 = scmp.lt.u32.totalorder %s2316_s28, %s2311_s11 }
  0x6f   : > { %p2320_p1 = scmp.lt.u32.totalorder %s2311_s11, %s2841_s21 }
  0x70   : > { %p2314_p0 = pnand %p2854_p13, %p2312_p12  ;;  %p2319_p4 = por %p2318_p9, %p2317_p7 }
  0x72   : > { %p2315_p2 = pneg %p2314_p0  ;;  %p2321_p3 = por %p2320_p1, %p2319_p4 }
  0x74   : > { %p2322_p10 = pnand %p2321_p3, %p2315_p2 }
  0x76   : > { %2325 = shalt.err (!%p2322_p10)
}
  0x77   : > { %s2326_s13 = scalar_lea.vmem %s2844_s4, 128  ;;  %s2606_s29 = smov [#allocation6]  }
  0x78   : > { %p2327_p12 = scmp.ne.s32.totalorder %s2844_s4, %s2326_s13  ;;  %s2331_s17 = sshll.u32 %s2606_s29, 4  ;;  %s2332_s17 = int_to_ptr.vmem [resolvable:$false] %s2331_s17 }
  0x79   : > { %s2333_s25 = scalar_lea.vmem %s2332_s17, 256  ;;  %p2334_p6 = scmp.lt.s32.totalorder %s2844_s4, %s2332_s17 }
  0x7a   : > { %p2329_p0 = pnand %p2327_p12, %p2854_p13  ;;  %p2335_p8 = scmp.lt.s32.totalorder %s2333_s25, %s2326_s13 }
  0x7c   : > { %p2330_p5 = pneg %p2329_p0  ;;  %p2336_p7 = por %p2335_p8, %p2334_p6 }
  0x7e   : > { %p2337_p9 = pnand %p2336_p7, %p2330_p5 }
  0x80   : > { %2340 = shalt.err (!%p2337_p9)
}
  0x81   : > { %2166 = dma.hbm_to_vmem [thread:$0]  (!%p2832_p11), %s2841_s21, 128, %s2844_s4, %s2848_s22  }
  0x82   : > { %s2341_s7 = scalar_lea.hbm %s3252_s6, 512  ;;  %p3316_p3 = scmp.ne.s32.totalorder %s3304_s24, 0 }
  0x83   : > { %p2342_p1 = scmp.ne.s32.totalorder %s3252_s6, %s2341_s7  ;;  %p2348_p5 = scmp.lt.u32.totalorder %s2341_s7, %s3252_s6 }
  0x85   : > { %p2344_p6 = pnand %p2342_p1, %p3316_p3 }
  0x87   : > { %p2345_p8 = pneg %p2344_p6 }
  0x89   : > { %p2350_p10 = pnand %p2348_p5, %p2345_p8 }
  0x8b   : > { %2353 = shalt.err (!%p2350_p10)
}
  0x8c   : > { %s2354_s25 = scalar_lea.vmem %s397_s16, 512  ;;  %p2362_p0 = scmp.lt.s32.totalorder %s397_s16, %s397_s16 }
  0x8d   : > { %p2355_p2 = scmp.ne.s32.totalorder %s397_s16, %s2354_s25  ;;  %p2363_p7 = scmp.lt.s32.totalorder %s2354_s25, %s2354_s25 }
  0x8f   : > { %p2357_p4 = pnand %p2355_p2, %p3316_p3  ;;  %p2364_p9 = por %p2363_p7, %p2362_p0 }
  0x91   : > { %p2358_p12 = pneg %p2357_p4 }
  0x93   : > { %p2365_p11 = pnand %p2364_p9, %p2358_p12 }
  0x95   : > { %2368 = shalt.err (!%p2365_p11)
}
  0x96   : > { %p3317_p1 = scmp.ne.s32.totalorder %s3302_s18, 0  ;;  %s3318_s1 = smov 8  }
  0x97   : > { %s3319_s4 = smov 128   ;;  %s2607_s11 = smov [#allocation14]  }
  0x98   : > { %2150 = dma.hbm_to_vmem [thread:$0]  (!%p3317_p1), %s3252_s6, 512, %s397_s16, [#allocation10], %s3319_s4, %s3319_s4, %s3318_s1  }
  0x99   : > { %s420_s7 = sshll.u32 %s2607_s11, 4  ;;  %s2608_s29 = smov [#allocation15]   ;;  %s421_s7 = int_to_ptr.vmem [resolvable:$true] %s420_s7 }
  0x9a   : > { %s434_s13 = sshll.u32 %s2608_s29, 4  ;;  %s2369_s30 = scalar_lea.hbm %s3254_s8, 512  ;;  %s435_s13 = int_to_ptr.vmem [resolvable:$true] %s434_s13 }
  0x9b   : > { %p2370_p11 = scmp.ne.s32.totalorder %s3254_s8, %s2369_s30  ;;  %p2376_p5 = scmp.lt.u32.totalorder %s2369_s30, %s3254_s8 }
  0x9d   : > { %p2372_p6 = pnand %p2370_p11, %p3316_p3 }
  0x9f   : > { %p2373_p8 = pneg %p2372_p6 }
  0xa1   : > { %p2378_p10 = pnand %p2376_p5, %p2373_p8 }
  0xa3   : > { %2381 = shalt.err (!%p2378_p10)
}
  0xa4   : > { %s2382_s16 = scalar_lea.vmem %s421_s7, 512  ;;  %p2390_p0 = scmp.lt.s32.totalorder %s421_s7, %s421_s7 }
  0xa5   : > { %p2383_p2 = scmp.ne.s32.totalorder %s421_s7, %s2382_s16  ;;  %p2391_p7 = scmp.lt.s32.totalorder %s2382_s16, %s2382_s16 }
  0xa7   : > { %p2385_p4 = pnand %p2383_p2, %p3316_p3  ;;  %p2392_p9 = por %p2391_p7, %p2390_p0 }
  0xa9   : > { %p2386_p12 = pneg %p2385_p4 }
  0xab   : > { %p2393_p13 = pnand %p2392_p9, %p2386_p12 }
  0xad   : > { %2396 = shalt.err (!%p2393_p13)
}
  0xae   : > { %2156 = dma.hbm_to_vmem [thread:$0]  (!%p3317_p1), %s3254_s8, 512, %s421_s7, [#allocation13], %s3319_s4, %s3319_s4, %s3318_s1  }
  0xaf   : > { %s2397_s28 = scalar_lea.hbm %s3255_s9, 16 }
  0xb0   : > { %p2398_p11 = scmp.ne.s32.totalorder %s3255_s9, %s2397_s28  ;;  %p2404_p8 = scmp.lt.u32.totalorder %s2397_s28, %s3255_s9 }
  0xb2   : > { %p2400_p13 = pnand %p2398_p11, %p3316_p3 }
  0xb4   : > { %p2401_p6 = pneg %p2400_p13 }
  0xb6   : > { %p2406_p5 = pnand %p2404_p8, %p2401_p6 }
  0xb8   : > { %2409 = shalt.err (!%p2406_p5)
}
  0xb9   : > { %s2410_s21 = scalar_lea.vmem %s435_s13, 16  ;;  %s2417_s1 = scalar_lea.vmem %s435_s13, 32 }
  0xba   : > { %p2411_p10 = scmp.ne.s32.totalorder %s435_s13, %s2410_s21  ;;  %p2418_p12 = scmp.lt.s32.totalorder %s435_s13, %s435_s13 }
  0xbb   : > { %p2419_p0 = scmp.lt.s32.totalorder %s2417_s1, %s2410_s21 }
  0xbc   : > { %p2413_p2 = pnand %p2411_p10, %p3316_p3 }
  0xbd   : > { %p2420_p7 = por %p2419_p0, %p2418_p12 }
  0xbe   : > { %p2414_p4 = pneg %p2413_p2 }
  0xc0   : > { %p2421_p9 = pnand %p2420_p7, %p2414_p4 }
  0xc2   : > { %2424 = shalt.err (!%p2421_p9)
}
  0xc3   : > { %2159 = dma.hbm_to_vmem [thread:$0]  (!%p3317_p1), %s3255_s9, 16, %s435_s13, [#allocation16]  }
  0xc4   : > { %s2943_s3 = scalar_lea.hbm %s3246_s0, %s2830_s12  ;;  %s455_s5 = scalar_lea.vmem [#allocation3], %s2827_s10 }
  0xc5   : > { %s462_s18 = sshll.u32 %s455_s5, 4  ;;  %s2952_s28 = scalar_lea.hbm %s3248_s2, %s2830_s12  ;;  %s2946_s18 = int_to_ptr.vmem [resolvable:$true] %s462_s18 }
  0xc6   : > { %s3320_s11 = sand.u32 1, %s2595_s27   ;;  %s2425_s29 = scalar_lea.hbm %s2943_s3, 128 }
  0xc7   : > { %s452_s13 = scalar_lea.sflag [#allocation4], %s3320_s11  ;;  %p2426_p3 = scmp.ne.s32.totalorder %s2943_s3, %s2425_s29 }
  0xc8   : > { %p3321_p1 = scmp.ne.s32.totalorder %s3315_s20, 0  ;;  %s2430_s21 = scalar_lea.hbm %s3246_s0, 256 }
  0xc9   : > { %p2431_p6 = scmp.lt.u32.totalorder %s2943_s3, %s3246_s0  ;;  %p2432_p8 = scmp.lt.u32.totalorder %s2430_s21, %s2425_s29 }
  0xca   : > { %p2428_p11 = pnand %p2426_p3, %p3321_p1  ;;  %p2434_p10 = scmp.lt.u32.totalorder %s2425_s29, %s2943_s3 }
  0xcb   : > { %p2433_p5 = por %p2432_p8, %p2431_p6 }
  0xcc   : > { %p2429_p13 = pneg %p2428_p11 }
  0xcd   : > { %p2435_p2 = por %p2434_p10, %p2433_p5 }
  0xcf   : > { %p2436_p4 = pnand %p2435_p2, %p2429_p13 }
  0xd1   : > { %2439 = shalt.err (!%p2436_p4)
}
  0xd2   : > { %s2440_s12 = scalar_lea.vmem %s2946_s18, 128  ;;  %s2609_s7 = smov [#allocation3]  }
  0xd3   : > { %p2441_p12 = scmp.ne.s32.totalorder %s2946_s18, %s2440_s12  ;;  %s2445_s24 = sshll.u32 %s2609_s7, 4  ;;  %s2446_s24 = int_to_ptr.vmem [resolvable:$false] %s2445_s24 }
  0xd4   : > { %s2447_s16 = scalar_lea.vmem %s2446_s24, 256  ;;  %p2448_p9 = scmp.lt.s32.totalorder %s2946_s18, %s2446_s24 }
  0xd5   : > { %p2443_p0 = pnand %p2441_p12, %p3321_p1  ;;  %p2449_p3 = scmp.lt.s32.totalorder %s2447_s16, %s2440_s12 }
  0xd7   : > { %p2444_p7 = pneg %p2443_p0  ;;  %p2450_p11 = por %p2449_p3, %p2448_p9 }
  0xd9   : > { %p2451_p6 = pnand %p2450_p11, %p2444_p7 }
  0xdb   : > { %2454 = shalt.err (!%p2451_p6)
}
  0xdc   : > { %p3322_p13 = scmp.ne.s32.totalorder %s3313_s23, 0  ;;  %s491_s5 = scalar_lea.vmem [#allocation8], %s2827_s10 }
  0xdd   : > { %s498_s14 = sshll.u32 %s491_s5, 4  ;;  %s2455_s30 = scalar_lea.hbm %s2952_s28, 128  ;;  %s499_s14 = int_to_ptr.vmem [resolvable:$true] %s498_s14 }
  0xde   : > { %2163 = dma.hbm_to_vmem [thread:$0]  (!%p3322_p13), %s2943_s3, 128, %s2946_s18, %s452_s13  }
  0xdf   : > { %p2456_p8 = scmp.ne.s32.totalorder %s2952_s28, %s2455_s30  ;;  %s2460_s17 = scalar_lea.hbm %s3248_s2, 256 }
  0xe0   : > { %p2461_p2 = scmp.lt.u32.totalorder %s2952_s28, %s3248_s2  ;;  %p2462_p4 = scmp.lt.u32.totalorder %s2460_s17, %s2455_s30 }
  0xe1   : > { %p2458_p5 = pnand %p2456_p8, %p3321_p1  ;;  %p2464_p0 = scmp.lt.u32.totalorder %s2455_s30, %s2952_s28 }
  0xe2   : > { %p2463_p12 = por %p2462_p4, %p2461_p2 }
  0xe3   : > { %p2459_p10 = pneg %p2458_p5 }
  0xe4   : > { %p2465_p7 = por %p2464_p0, %p2463_p12 }
  0xe6   : > { %p2466_p9 = pnand %p2465_p7, %p2459_p10 }
  0xe8   : > { %2469 = shalt.err (!%p2466_p9)
}
  0xe9   : > { %s2470_s10 = scalar_lea.vmem %s499_s14, 128  ;;  %s2610_s3 = smov [#allocation8]  }
  0xea   : > { %p2471_p3 = scmp.ne.s32.totalorder %s499_s14, %s2470_s10  ;;  %s2475_s18 = sshll.u32 %s2610_s3, 4  ;;  %s2476_s18 = int_to_ptr.vmem [resolvable:$false] %s2475_s18 }
  0xeb   : > { %s2477_s13 = scalar_lea.vmem %s2476_s18, 256  ;;  %p2478_p8 = scmp.lt.s32.totalorder %s499_s14, %s2476_s18 }
  0xec   : > { %p2473_p11 = pnand %p2471_p3, %p3321_p1  ;;  %p2479_p5 = scmp.lt.s32.totalorder %s2477_s13, %s2470_s10 }
  0xee   : > { %p2474_p6 = pneg %p2473_p11  ;;  %p2480_p13 = por %p2479_p5, %p2478_p8 }
  0xf0   : > { %p2481_p2 = pnand %p2480_p13, %p2474_p6 }
  0xf2   : > { %2484 = shalt.err (!%p2481_p2)
}
  0xf3   : > { %p3323_p4 = scmp.ne.s32.totalorder %s3313_s23, 0  ;;  %p3324_p10 = scmp.ne.s32.totalorder %s3301_s15, 0 }
  0xf4   : > { %s2999_s20 = sand.u32 (!%p3324_p10), 1, %s2591_s26   ;;  %p3325_p1 = scmp.ne.s32.totalorder (!%p3324_p10), %s3308_s19, 0 }
  0xf5   : > { %2169 = dma.hbm_to_vmem [thread:$0]  (!%p3323_p4), %s2952_s28, 128, %s499_s14, %s2848_s22  }
  0xf6   : > { %514 = sbr.rel (%p3324_p10) target bundleno = 2149 (0x865), region = 68  ;;  %s3002_s1 = sshll.u32 (!%p3324_p10), %s2999_s20, 3 }
  0xf7   : > { %s517_s4 = scalar_lea.sflag (!%p3324_p10), [#allocation4], %s2999_s20  ;;  %s520_s12 = scalar_lea.vmem (!%p3324_p10), [#allocation3], %s3002_s1 }
  0xfd   : > { %2558 = dma.done.wait (%p3325_p1), %s517_s4, 128  }
  0xfe   : > { %2560 = vsyncadd (%p3325_p1), %s517_s4, 4294967168  ;;  %s3326_s22 = sld [smem:[#allocation29_spill]]  ;;  %s529_s28 = scalar_lea.vmem [#allocation6], %s3002_s1 }
 0x104   : > { %s525_s15 = sand.u32 1, %s3326_s22  }
 0x105   : > { %s526_s23 = scalar_lea.sflag [#allocation7], %s525_s15 }
 0x106   : > { %2562 = dma.done.wait (%p3325_p1), %s526_s23, 256  }
 0x107   : > { %2564 = vsyncadd (%p3325_p1), %s526_s23, 4294967040  ;;  %s538_s7 = scalar_lea.vmem [#allocation8], %s3002_s1  ;;  %p3327_p13 = scmp.eq.s32.totalorder %s3326_s22, 0 }
 0x109   : > { %2566 = dma.done.wait (%p3327_p13), [#allocation10], 1024   ;;  %p3328_p12 = pmov %p3327_p13 }
 0x10b   : > { %2568 = vsyncadd (%p3328_p12), [#allocation10], 4294966272  ;;  %p3329_p0 = pmov %p3328_p12 }
 0x10d   : > { %2570 = dma.done.wait (%p3329_p0), [#allocation13], 528   ;;  %p3330_p7 = pmov %p3329_p0 }
 0x10e   : > { %p3331_p9 = pmov %p3329_p0 }
 0x10f   : > { %2572 = vsyncadd (%p3330_p7), [#allocation13], 4294966768 }
 0x110   : > { %2574 = dma.done.wait (%p3331_p9), [#allocation16], 16   ;;  %p3332_p3 = pmov %p3329_p0 }
 0x111   : > { %v2611_v0 = vmov 0.0|0.0   ;;  %vm2612_vm0 = vmmov 0   ;;  %v2613_v1 = vmov 0.0   ;;  %v714_v2 = vld [vmem:[#allocation11] sm:$0xff]  ;;  %v715_v3 = vld [vmem:[#allocation11 + $0x8] sm:$0xff]  ;;  %v716_v7 = vld [vmem:[#allocation11 + $0x10] sm:$0xff] }
 0x112   : > { %2576 = vsyncadd (%p3332_p3), [#allocation16], 4294967280  ;;  %2096 = vmatprep.subr.bf16.mxu1 %v2611_v0  ;;  %2090 = vmatprep.subr.bf16.mxu0 %v2611_v0  ;;  %v629_v4 = vld [vmem:[#allocation9] sm:$0xff]  ;;  %v2097_v5 = vpack.c.bf16 %v715_v3, %v714_v2  ;;  %v630_v6 = vld [vmem:[#allocation9 + $0x8] sm:$0xff]  ;;  %vm640_vm1 = vcmask 261120   ;;  %s3333_s16 = sld [smem:[#allocation37_spill]] }
 0x113   : > { %2025 = vmatprep.mubr.msk.f32.mxu1 %vm2612_vm0, %v2613_v1  ;;  %2014 = vmatprep.mubr.msk.f32.mxu0 %vm2612_vm0, %v2613_v1  ;;  %v717_v8 = vld [vmem:[#allocation11 + $0x18] sm:$0xff]  ;;  %v2091_v9 = vpack.c.bf16 %v630_v6, %v629_v4  ;;  %v631_v10 = vld [vmem:[#allocation9 + $0x10] sm:$0xff]  ;;  %v627_v14 = vld [vmem:[%s529_s28] sm:$0xff]  ;;  %vm885_vm2 = vcmask 64512   ;;  %s2614_s5 = smov 120   ;;  %s2615_s14 = smov 112  }
 0x114   : > { %v632_v11 = vld [vmem:[#allocation9 + $0x18] sm:$0xff]  ;;  %2098 = vmatpush3.bf16.msra.mxu1 %v2097_v5  ;;  %v2100_v12 = vpack.c.bf16 %v717_v8, %v716_v7  ;;  %v1941_v16 = vld [vmem:[#allocation12] ss:$0 sm:$0xff]  ;;  %s2616_s30 = smov 104   ;;  %v798_v25 = vld [vmem:[#allocation14] sm:$0xff]  ;;  %p620_p11 = scmp.lt.s32.totalorder %s3326_s22, 1 }
 0x115   : > { %2092 = vmatpush3.bf16.msra.mxu0 %v2091_v9  ;;  %2099 = vmatprep.subr.bf16.mxu1 %v2611_v0  ;;  %v2094_v13 = vpack.c.bf16 %v632_v11, %v631_v10  ;;  %v626_v15 = vld [vmem:[%s520_s12] sm:$0xff]  ;;  %s3334_s21 = sld [smem:[#allocation35_spill]]  ;;  %v2617_v33 = vmov 0   ;;  %v1943_v46 = vld [vmem:[#allocation15] ss:$0 sm:$0xff]  ;;  %s1937_s3 = sshll.u32 %s2999_s20, 5 }
 0x116   : > { %2093 = vmatprep.subr.bf16.mxu0 %v2611_v0  ;;  %v799_v26 = vld [vmem:[#allocation14 + $0x8] sm:$0xff]  ;;  %v800_v27 = vld [vmem:[#allocation14 + $0x10] sm:$0xff]  ;;  %v801_v29 = vld [vmem:[#allocation14 + $0x18] sm:$0xff]  ;;  %s621_s11 = scalar_select %p620_p11, %s3326_s22, 1  ;;  %vm1231_vm5 = vcmask 130112   ;;  %vm1408_vm6 = vcmask 195712  }
 0x117   : > { %v2103_v28 = vpack.c.bf16 %v799_v26, %v798_v25  ;;  %v2106_v30 = vpack.c.bf16 %v801_v29, %v800_v27  ;;  %v628_v31 = vld [vmem:[%s538_s7] sm:$0xff]  ;;  %s3098_s18 = scalar_lea.vmem [#allocation18], %s1937_s3  ;;  %s3337_s12 = sld [smem:[#allocation39_spill]]  ;;  %vm1585_vm7 = vcmask 261312  }
 0x118   : > { %2101 = vmatpush3.bf16.msra.mxu1 %v2100_v12  ;;  %v1939_v17 = vld [vmem:[%s3333_s16] ss:$0 sm:$0xff]  ;;  %s1938_s29 = sshll.u32 %s621_s11, 1  ;;  %s2618_s16 = smov 8  }
 0x119   : > { %2095 = vmatpush3.bf16.msra.mxu0 %v2094_v13  ;;  %2039 = vmatprep.subr.mxu1 %v2613_v1  ;;  %s1969_s11 = sshll.u32 %s3326_s22, 9  ;;  %s1679_s3 = scalar_lea.sflag [#allocation19], %s2999_s20 }
 0x11a   : > { %2102 = vmatprep.subr.bf16.mxu0 %v2611_v0  ;;  %s2621_s4 = smov [#allocation18]  }
 0x11b   : > { %2026 = vmatmul.mubr.msk.f32.vlgmr.msra.gmra.mrb[0].mxu1 %vm640_vm1, %v627_v14  ;;  %s623_s10 = scalar_lea.vmem %s3334_s21, %s1938_s29  ;;  %s1705_s29 = sshll.u32 %s3098_s18, 4  ;;  %s3166_s29 = int_to_ptr.vmem [resolvable:$true] %s1705_s29 }
 0x11c   : > { %2015 = vmatmul.mubr.msk.f32.vlgmr.msra.gmra.mrb[0].mxu0 %vm640_vm1, %v626_v15  ;;  %2041 = vmatprep.mubr.msk.f32.mxu1 %vm2612_vm0, %v2613_v1  ;;  %v883_v32 = vld [vmem:[%s623_s10] sm:$0x3]  ;;  %s3339_s21 = sld [smem:[#allocation42_spill]]  ;;  %s2485_s13 = scalar_lea.vmem %s3166_s29, 512 }
 0x11d   : > { %2036 = vmatprep.mubr.msk.f32.mxu0 %vm2612_vm0, %v2613_v1  ;;  %2104 = vmatpush3.bf16.msra.mxu0 %v2103_v28  ;;  %vm884_vm3 = vnez %v883_v32  ;;  %p2486_p6 = scmp.ne.s32.totalorder %s3166_s29, %s2485_s13  ;;  %s2489_s15 = sshll.u32 %s2621_s4, 4  ;;  %s2490_s15 = int_to_ptr.vmem [resolvable:$false] %s2489_s15 }
 0x11e   : > { %2105 = vmatprep.subr.bf16.mxu0 %v2611_v0  ;;  %v962_v34 = vsel %vm884_vm3, 16843009, %v2617_v33  ;;  %p2492_p4 = scmp.lt.s32.totalorder %s3166_s29, %s2490_s15 }
 0x11f   : > { %v963_v35 = vunpack.c.0.s8 %v962_v34 }
 0x121   : > { %2107 = vmatpush3.bf16.msra.mxu0 %v2106_v30  ;;  %vm3074_vm4 = vcmp.ne.s32.totalorder %v963_v35, 0 }
 0x122   : > { %2059 = vmatprep.subr.mxu0 %v2613_v1  ;;  %s3164_s10 = scalar_lea.hbm %s3339_s21, %s1969_s11 }
 0x124   : > { %2037 = vmatmul.mubr.msk.f32.vlgmr.msra.gmra.mrb[2].mxu0 %vm640_vm1, %v628_v31 }
 0x125   : > { %2061 = vmatprep.mubr.msk.f32.mxu0 %vm2612_vm0, %v2613_v1 }
 0x1ee   : > { %v794_v18 = vpop.f32.mrb[0].mxu1 }
 0x1ef   : > { %v795_v19 = vadd.f32 %v1941_v16, %v794_v18  ;;  %v710_v20 = vpop.f32.mrb[0].mxu0  ;;  %v2027_v21 = vpop.f32.mrb[1].mxu1 }
 0x1f0   : > { %v711_v22 = vadd.f32 %v1939_v17, %v710_v20  ;;  %v2016_v23 = vpop.f32.mrb[1].mxu0 }
 0x1f1   : > { %1057 = vrot.lane.b32.xlu1 %v795_v19, %s2614_s5  ;;  %2040 = vmatpush3.xpose.msk.msra.mxu1 %vm885_vm2, %v795_v19 }
 0x1f2   : > { %v882_v24 = vmul.f32 0.35355338, %v711_v22  ;;  %2044 = vmatprep.subr.mxu1 %v2613_v1 }
 0x1f4   : > { %2042 = vmatmul.mubr.msk.f32.vlgmr.msra.gmra.mrb[2].mxu1 %vm885_vm2, %v882_v24 }
 0x1f5   : > { %1055 = vrot.lane.b32.xlu1 %v882_v24, %s2614_s5  ;;  %2046 = vmatprep.mubr.msk.f32.mxu1 %vm2612_vm0, %v2613_v1 }
 0x1f7   : > { %v878_v47 = vpop.f32.mrb[2].mxu0 }
 0x1f8   : > { %v3083_v48 = vadd.f32 %v1943_v46, %v878_v47  ;;  %v2038_v49 = vpop.f32.mrb[3].mxu0 }
 0x1f9   : > { %1233 = vrot.lane.b32.xlu1 %v882_v24, %s2615_s14 }
 0x1fa   : > { %2045 = vmatpush3.msra.mxu1 %v3083_v48 }
 0x1fb   : > { %2049 = vmatprep.subr.mxu1 %v2613_v1 }
 0x1fd   : > { %1412 = vrot.lane.b32.xlu1 %v795_v19, %s2616_s30 }
 0x201   : > { %1410 = vrot.lane.b32.xlu1 %v882_v24, %s2616_s30 }
 0x263   : > { %v1058_v50 = vpop.permute.xlu1 %1057 }
 0x267   : > { %v1056_v51 = vpop.permute.xlu1 %1055 }
 0x26b   : > { %v1234_v52 = vpop.permute.xlu1 %1233 }
 0x26f   : > { %v1413_v55 = vpop.permute.xlu1 %1412 }
 0x273   : > { %v1411_v57 = vpop.permute.xlu1 %1410 }
 0x2c7   : > { %v958_v37 = vpop.f32.mrb[2].mxu1 }
 0x2c8   : > { %v965_v38 = vsel %vm3074_vm4, -1e+09, %v958_v37  ;;  %v2043_v39 = vpop.f32.mrb[3].mxu1 }
 0x2c9   : > { %v966_v40 = vsel %vm885_vm2, %v965_v38, -inf }
 0x2ca   : > { %967 = vmax.xlane.f32.xlu0 %v966_v40 }
 0x357   : > { %v968_v41 = vpop.xlane.xlu0 %967 }
 0x358   : > { %v969_v42 = vsub.f32 %v965_v38, %v968_v41 }
 0x35a   : > { %v970_v43 = vmul.f32 1.442695, %v969_v42 }
 0x35c   : > { %2239 = vpow2.f32 %v970_v43 }
 0x366   : > { %v2240_v44 = vpop.eup %2239 }
 0x367   : > { %v972_v45 = vsel %vm885_vm2, %v2240_v44, 0.0 }
 0x368   : > { %973 = vadd.xlane.f32.xlu0 %v972_v45 }
 0x37e   : > { %1235 = vrot.lane.b32.xlu0 %v795_v19, %s2615_s14 }
 0x3f5   : > { %v974_v53 = vpop.xlane.xlu0 %973 }
 0x3f6   : > { %2241 = vrcp.f32 %v974_v53 }
 0x3f9   : > { %v1236_v54 = vpop.permute.xlu0 %1235 }
 0x3fa   : > { %2060 = vmatpush3.xpose.msk.msra.mxu0 %vm885_vm2, %v1236_v54  ;;  %v1591_v54 = vld [vmem:[%s3337_s12 + $0x18] sm:$0xff] }
 0x3fb   : > { %2069 = vmatprep.subr.mxu0 %v2613_v1 }
 0x3fd   : > { %2062 = vmatmul.mubr.msk.f32.vlgmr.msra.gmra.mrb[4].mxu0 %vm885_vm2, %v1234_v52 }
 0x3fe   : > { %2070 = vmatpush3.xpose.msk.msra.mxu0 %vm885_vm2, %v1413_v55  ;;  %2071 = vmatprep.mubr.msk.f32.mxu0 %vm2612_vm0, %v2613_v1 }
 0x3ff   : > { %2108 = vmatprep.subr.bf16.mxu0 %v2611_v0 }
 0x400   : > { %v2242_v56 = vpop.eup %2241 }
 0x401   : > { %v976_v58 = vmul.f32 %v2242_v56, %v974_v53  ;;  %2072 = vmatmul.mubr.msk.f32.vlgmr.msra.gmra.mrb[6].mxu0 %vm885_vm2, %v1411_v57  ;;  %v1590_v53 = vld [vmem:[%s3337_s12 + $0x10] sm:$0xff] }
 0x402   : > { %2087 = vmatprep.mubr.msk.f32.mxu0 %vm2612_vm0, %v2613_v1 }
 0x403   : > { %v977_v59 = vsub.f32 2.0, %v976_v58 }
 0x405   : > { %v978_v60 = vmul.f32 %v2242_v56, %v977_v59 }
 0x407   : > { %v979_v61 = vmul.f32 %v2240_v44, %v978_v60 }
 0x409   : > { %980 = vst.msk [vmem:[%s3098_s18] sm:$0xff] %vm885_vm2, %v979_v61  ;;  %2047 = vmatmul.mubr.msk.f32.vlgmr.msra.gmra.mrb[4].mxu1 %vm885_vm2, %v979_v61 }
 0x40a   : > { %2050 = vmatpush3.xpose.msk.msra.mxu1 %vm885_vm2, %v1058_v50  ;;  %2051 = vmatprep.mubr.msk.f32.mxu1 %vm2612_vm0, %v2613_v1  ;;  %v1588_v50 = vld [vmem:[%s3337_s12] sm:$0xff] }
 0x40b   : > { %2054 = vmatprep.subr.mxu1 %v2613_v1 }
 0x40d   : > { %2052 = vmatmul.mubr.msk.f32.vlgmr.msra.gmra.mrb[6].mxu1 %vm885_vm2, %v1056_v51  ;;  %v1589_v51 = vld [vmem:[%s3337_s12 + $0x8] sm:$0xff] }
 0x40e   : > { %2056 = vmatprep.mubr.msk.f32.mxu1 %vm2612_vm0, %v2613_v1  ;;  %v2109_v52 = vpack.c.bf16 %v1589_v51, %v1588_v50 }
 0x410   : > { %2110 = vmatpush3.bf16.msra.mxu0 %v2109_v52 }
 0x411   : > { %2111 = vmatprep.subr.bf16.mxu0 %v2611_v0 }
 0x4d0   : > { %v1307_v62 = vpop.f32.mrb[4].mxu0 }
 0x4d1   : > { %v1311_v63 = vsel %vm3074_vm4, -1e+09, %v1307_v62  ;;  %v2063_v2 = vpop.f32.mrb[5].mxu0 }
 0x4d2   : > { %v1312_v3 = vsel %vm885_vm2, %v1311_v63, -inf }
 0x4d3   : > { %1313 = vmax.xlane.f32.xlu0 %v1312_v3 }
 0x4d4   : > { %v1484_v4 = vpop.f32.mrb[6].mxu0 }
 0x4d5   : > { %v2073_v5 = vpop.f32.mrb[7].mxu0  ;;  %v1488_v12 = vsel %vm3074_vm4, -1e+09, %v1484_v4 }
 0x4d6   : > { %v1489_v13 = vsel %vm885_vm2, %v1488_v12, -inf }
 0x4dc   : > { %v1050_v6 = vpop.f32.mrb[4].mxu1 }
 0x4dd   : > { %1054 = vst.msk [vmem:[#allocation2] sm:$0xff] %vm885_vm2, %v1050_v6  ;;  %v2048_v7 = vpop.f32.mrb[5].mxu1 }
 0x4e0   : > { %v1129_v8 = vpop.f32.mrb[6].mxu1 }
 0x4e1   : > { %v1133_v9 = vsel %vm3074_vm4, -1e+09, %v1129_v8  ;;  %v2053_v10 = vpop.f32.mrb[7].mxu1 }
 0x4e2   : > { %v1134_v11 = vsel %vm885_vm2, %v1133_v9, -inf }
 0x4e3   : > { %1135 = vmax.xlane.f32.xlu1 %v1134_v11 }
 0x4e7   : > { %1490 = vmax.xlane.f32.xlu1 %v1489_v13 }
 0x560   : > { %v1314_v14 = vpop.xlane.xlu0 %1313 }
 0x561   : > { %v1315_v15 = vsub.f32 %v1311_v63, %v1314_v14 }
 0x563   : > { %v1316_v16 = vmul.f32 1.442695, %v1315_v15 }
 0x565   : > { %2243 = vpow2.f32 %v1316_v16 }
 0x56f   : > { %v2244_v17 = vpop.eup %2243 }
 0x570   : > { %v1136_v18 = vpop.xlane.xlu1 %1135  ;;  %v1318_v19 = vsel %vm885_vm2, %v2244_v17, 0.0 }
 0x571   : > { %1319 = vadd.xlane.f32.xlu0 %v1318_v19  ;;  %v1137_v20 = vsub.f32 %v1133_v9, %v1136_v18 }
 0x573   : > { %v1138_v23 = vmul.f32 1.442695, %v1137_v20 }
 0x574   : > { %v1491_v21 = vpop.xlane.xlu1 %1490 }
 0x575   : > { %v1492_v22 = vsub.f32 %v1488_v12, %v1491_v21 }
 0x577   : > { %v1493_v24 = vmul.f32 1.442695, %v1492_v22 }
 0x579   : > { %2245 = vpow2.f32 %v1493_v24 }
 0x57a   : > { %2247 = vpow2.f32 %v1138_v23 }
 0x583   : > { %v2246_v25 = vpop.eup %2245 }
 0x584   : > { %v1495_v26 = vsel %vm885_vm2, %v2246_v25, 0.0  ;;  %v2248_v27 = vpop.eup %2247 }
 0x585   : > { %1496 = vadd.xlane.f32.xlu1 %v1495_v26  ;;  %v1140_v28 = vsel %vm885_vm2, %v2248_v27, 0.0 }
 0x587   : > { %1151 = vrot.lane.b32.xlu0 %v3083_v48, %s2614_s5  ;;  %s2619_s5 = smov 16  }
 0x589   : > { %1141 = vadd.xlane.f32.xlu1 %v1140_v28 }
 0x59a   : > { %1328 = vrot.lane.b32.xlu1 %v3083_v48, %s2615_s14  ;;  %s2620_s14 = smov 24  }
 0x59e   : > { %1505 = vrot.lane.b32.xlu1 %v3083_v48, %s2616_s30  ;;  %s3338_s30 = sld [smem:[#allocation32_spill]] }
 0x5a4   : > { %p3340_p8 = scmp.ne.s32.totalorder %s3338_s30, 0 }
 0x5a6   : > { %p2487_p5 = pnand %p2486_p6, %p3340_p8 }
 0x5a8   : > { %p2488_p2 = pneg %p2487_p5 }
 0x5fe   : > { %v1320_v29 = vpop.xlane.xlu0 %1319 }
 0x5ff   : > { %2249 = vrcp.f32 %v1320_v29 }
 0x602   : > { %v1152_v30 = vpop.permute.xlu0 %1151 }
 0x603   : > { %2055 = vmatpush3.msra.mxu1 %v1152_v30 }
 0x604   : > { %2064 = vmatprep.subr.mxu1 %v2613_v1 }
 0x609   : > { %v2250_v31 = vpop.eup %2249 }
 0x60a   : > { %v1322_v32 = vmul.f32 %v2250_v31, %v1320_v29 }
 0x60c   : > { %v1323_v33 = vsub.f32 2.0, %v1322_v32 }
 0x60e   : > { %v1324_v34 = vmul.f32 %v2250_v31, %v1323_v33 }
 0x610   : > { %v1325_v35 = vmul.f32 %v2244_v17, %v1324_v34 }
 0x612   : > { %1954 = vst.msk [vmem:[%s3098_s18 + $0x10] sm:$0xff] %vm885_vm2, %v1325_v35  ;;  %v1497_v36 = vpop.xlane.xlu1 %1496 }
 0x613   : > { %2251 = vrcp.f32 %v1497_v36 }
 0x616   : > { %v1142_v37 = vpop.xlane.xlu1 %1141 }
 0x617   : > { %2253 = vrcp.f32 %v1142_v37 }
 0x61a   : > { %v1329_v48 = vpop.permute.xlu1 %1328 }
 0x61d   : > { %v2252_v38 = vpop.eup %2251 }
 0x61e   : > { %v1499_v39 = vmul.f32 %v2252_v38, %v1497_v36  ;;  %v1506_v49 = vpop.permute.xlu1 %1505 }
 0x620   : > { %v1500_v40 = vsub.f32 2.0, %v1499_v39 }
 0x621   : > { %v2254_v41 = vpop.eup %2253 }
 0x622   : > { %v1501_v42 = vmul.f32 %v2252_v38, %v1500_v40  ;;  %v1144_v43 = vmul.f32 %v2254_v41, %v1142_v37 }
 0x624   : > { %v1502_v44 = vmul.f32 %v2246_v25, %v1501_v42  ;;  %v1145_v45 = vsub.f32 2.0, %v1144_v43 }
 0x626   : > { %1958 = vst.msk [vmem:[%s3098_s18 + $0x18] sm:$0xff] %vm885_vm2, %v1502_v44  ;;  %v1146_v46 = vmul.f32 %v2254_v41, %v1145_v45 }
 0x628   : > { %v1147_v47 = vmul.f32 %v2248_v27, %v1146_v46 }
 0x62a   : > { %1950 = vst.msk [vmem:[%s3098_s18 + $0x8] sm:$0xff] %vm885_vm2, %v1147_v47  ;;  %2057 = vmatmul.mubr.msk.f32.vlgmr.msra.gmra.mrb[8].mxu1 %vm885_vm2, %v1147_v47  ;;  %s2491_s18 = scalar_lea.vmem %s2490_s15, 1024 }
 0x62b   : > { %2065 = vmatpush3.msra.mxu1 %v1329_v48  ;;  %2066 = vmatprep.mubr.msk.f32.mxu1 %vm2612_vm0, %v2613_v1  ;;  %p2493_p10 = scmp.lt.s32.totalorder %s2491_s18, %s2485_s13 }
 0x62c   : > { %2074 = vmatprep.subr.mxu1 %v2613_v1 }
 0x62d   : > { %p2494_p1 = por %p2493_p10, %p2492_p4 }
 0x62e   : > { %2067 = vmatmul.mubr.msk.f32.vlgmr.msra.gmra.mrb[10].mxu1 %vm885_vm2, %v1325_v35 }
 0x62f   : > { %2075 = vmatpush3.msra.mxu1 %v1506_v49  ;;  %2076 = vmatprep.mubr.msk.f32.mxu1 %vm2612_vm0, %v2613_v1  ;;  %v2112_v1 = vpack.c.bf16 %v1591_v54, %v1590_v53  ;;  %p2495_p13 = pnand %p2494_p1, %p2488_p2 }
 0x631   : > { %2113 = vmatpush3.bf16.msra.mxu0 %v2112_v1 }
 0x632   : > { %2077 = vmatmul.mubr.msk.f32.vlgmr.msra.gmra.mrb[12].mxu1 %vm885_vm2, %v1502_v44 }
 0x6fd   : > { %v1223_v55 = vpop.f32.mrb[8].mxu1 }
 0x6fe   : > { %1228 = vrot.lane.b32.xlu0 %v1223_v55, %s2618_s16  ;;  %v2058_v56 = vpop.f32.mrb[9].mxu1 }
 0x701   : > { %v1400_v57 = vpop.f32.mrb[10].mxu1 }
 0x702   : > { %1405 = vrot.lane.b32.xlu1 %v1400_v57, %s2619_s5  ;;  %v2068_v58 = vpop.f32.mrb[11].mxu1 }
 0x705   : > { %v1577_v59 = vpop.f32.mrb[12].mxu1 }
 0x706   : > { %1582 = vrot.lane.b32.xlu0 %v1577_v59, %s2620_s14  ;;  %v2078_v60 = vpop.f32.mrb[13].mxu1 }
 0x770   : > { %v1229_v61 = vpop.permute.xlu0 %1228 }
 0x771   : > { %1232 = vst.msk [vmem:[#allocation2] sm:$0xff] %vm1231_vm5, %v1229_v61 }
 0x774   : > { %v1406_v0 = vpop.permute.xlu1 %1405 }
 0x775   : > { %1409 = vst.msk [vmem:[#allocation2] sm:$0xff] %vm1408_vm6, %v1406_v0 }
 0x778   : > { %v1583_v62 = vpop.permute.xlu0 %1582 }
 0x779   : > { %1586 = vst.msk [vmem:[#allocation2] sm:$0xff] %vm1585_vm7, %v1583_v62 }
 0x780   : > { %v1587_v63 = vld [vmem:[#allocation2] sm:$0xff] }
 0x781   : > { %2088 = vmatmul.mubr.msk.f32.vlgmr.msra.gmra.mrb[8].mxu0 %vm640_vm1, %v1587_v63 }
 0x782   : > { %2498 = shalt.err (!%p2495_p13)
}
 0x783   : > { %s2499_s23 = scalar_lea.hbm %s3164_s10, 512  ;;  %s2503_s19 = scalar_lea.hbm %s3339_s21, 1024 }
 0x784   : > { %p2500_p12 = scmp.ne.s32.totalorder %s3164_s10, %s2499_s23  ;;  %p2504_p9 = scmp.lt.u32.totalorder %s3164_s10, %s3339_s21 }
 0x785   : > { %p2505_p3 = scmp.lt.u32.totalorder %s2503_s19, %s2499_s23  ;;  %p2507_p6 = scmp.lt.u32.totalorder %s2499_s23, %s3164_s10 }
 0x786   : > { %p2501_p0 = pnand %p2500_p12, %p3340_p8 }
 0x787   : > { %p2506_p11 = por %p2505_p3, %p2504_p9 }
 0x788   : > { %p2502_p7 = pneg %p2501_p0 }
 0x789   : > { %p2508_p5 = por %p2507_p6, %p2506_p11 }
 0x78b   : > { %p2509_p2 = pnand %p2508_p5, %p2502_p7 }
 0x78d   : > { %2512 = shalt.err (!%p2509_p2)
}
 0x78e   : > { %s2622_s14 = smov 128   ;;  %s3341_s25 = sld [smem:[#allocation40_spill]] }
 0x78f   : > { %2141 = dma.vmem_to_hbm [thread:$0]  (%p3340_p8), %s3166_s29, 512, %s3164_s10, %s1679_s3, %s2622_s14, %s2622_s14, %s2618_s16  }
 0x790   : > { %s1964_s13 = sshll.u32 %s3326_s22, 7  ;;  %s612_s4 = scalar_lea.vmem [#allocation17], %s3002_s1 }
 0x791   : > { %s1692_s15 = sshll.u32 %s612_s4, 4  ;;  %s3342_s28 = sld [smem:[#allocation41_spill]]  ;;  %s3203_s15 = int_to_ptr.vmem [resolvable:$true] %s1692_s15 }
 0x792   : > { %s1674_s16 = scalar_lea.sflag [#allocation5], %s2999_s20  ;;  %s2513_s29 = scalar_lea.vmem %s3203_s15, 128 }
 0x793   : > { %p2514_p4 = scmp.ne.s32.totalorder %s3203_s15, %s2513_s29  ;;  %s2623_s1 = smov [#allocation17]  }
 0x794   : > { %v1960_v2 = vld [vmem:[%s3341_s25] ss:$0 sm:$0xff]  ;;  %s2517_s22 = sshll.u32 %s2623_s1, 4  ;;  %s2518_s22 = int_to_ptr.vmem [resolvable:$false] %s2517_s22 }
 0x795   : > { %p2515_p10 = pnand %p2514_p4, %p3340_p8  ;;  %s2519_s10 = scalar_lea.vmem %s2518_s22, 256 }
 0x796   : > { %p2520_p13 = scmp.lt.s32.totalorder %s3203_s15, %s2518_s22  ;;  %p2521_p12 = scmp.lt.s32.totalorder %s2519_s10, %s2513_s29 }
 0x797   : > { %s3343_s7 = smov %s3342_s28  ;;  %s3201_s19 = scalar_lea.hbm %s3342_s28, %s1964_s13 }
 0x798   : > { %p2516_p1 = pneg %p2515_p10  ;;  %p2522_p0 = por %p2521_p12, %p2520_p13 }
 0x79a   : > { %p2523_p7 = pnand %p2522_p0, %p2516_p1 }
 0x854   : > { %v1668_v3 = vpop.f32.mrb[8].mxu0 }
 0x855   : > { %v1669_v4 = vadd.f32 %v1960_v2, %v1668_v3  ;;  %v2089_v5 = vpop.f32.mrb[9].mxu0 }
 0x857   : > { %1672 = vst.msk [vmem:[%s612_s4] sm:$0xff] %vm640_vm1, %v1669_v4 }
 0x858   : > { %2526 = shalt.err (!%p2523_p7)
}
 0x859   : > { %s2527_s20 = scalar_lea.hbm %s3201_s19, 128  ;;  %s2531_s5 = scalar_lea.hbm %s3343_s7, 256 }
 0x85a   : > { %p2528_p9 = scmp.ne.s32.totalorder %s3201_s19, %s2527_s20  ;;  %p2532_p6 = scmp.lt.u32.totalorder %s3201_s19, %s3343_s7 }
 0x85b   : > { %p2533_p5 = scmp.lt.u32.totalorder %s2531_s5, %s2527_s20  ;;  %p2535_p4 = scmp.lt.u32.totalorder %s2527_s20, %s3201_s19 }
 0x85c   : > { %p2529_p3 = pnand %p2528_p9, %p3340_p8 }
 0x85d   : > { %p2534_p2 = por %p2533_p5, %p2532_p6 }
 0x85e   : > { %p2530_p11 = pneg %p2529_p3 }
 0x85f   : > { %p2536_p10 = por %p2535_p4, %p2534_p2 }
 0x861   : > { %p2537_p1 = pnand %p2536_p10, %p2530_p11 }
 0x863   : > { %2540 = shalt.err (!%p2537_p1)
}
 0x864   : > { %2140 = dma.vmem_to_hbm [thread:$0]  (%p3340_p8), %s3203_s15, 128, %s3201_s19, %s1674_s16  }
 0x865 PF: > { %s3344_s17 = sld [smem:[#allocation27_spill]]  ;;  %s3345_s25 = sld [smem:[#allocation33_spill]] }
 0x866   : > { %s3346_s13 = sld [smem:[#allocation28_spill]] }
 0x86b   : > { %s1720_s4 = sand.u32 1, %s3344_s17   ;;  %p3347_p13 = scmp.ne.s32.totalorder %s3345_s25, 0 }
 0x86c   : > { %p3348_p12 = scmp.ge.s32.totalorder %s3346_s13, 2  ;;  %s1721_s18 = scalar_lea.sflag [#allocation5], %s1720_s4 }
 0x86e   : > { %p2171_p0 = pnand %p3348_p12, %p3347_p13 }
 0x870   : > { %2578 = dma.done.wait (!%p2171_p0), %s1721_s18, 128  }
 0x871   : > { %2580 = vsyncadd (!%p2171_p0), %s1721_s18, 4294967168  ;;  %s1730_s23 = scalar_lea.sflag [#allocation19], %s1720_s4 }
 0x872   : > { %2582 = dma.done.wait (!%p2171_p0), %s1730_s23, 512  }
 0x873   : > { %2584 = vsyncadd (!%p2171_p0), %s1730_s23, 4294966784  ;;  %s3349_s28 = sld [smem:[#allocation30_spill]]  ;;  %s3350_s30 = sld [smem:[#allocation31_spill]] }
 0x874   : > { %s3351_s25 = smov %s2591_s26  ;;  %s3352_s26 = smov %s2595_s27 }
 0x879   : > { %p36_p8 = scmp.ge.s32.totalorder %s3349_s28, 4   ;;  %s3353_s27 = smov %s3350_s30 }
 0x87b   :  { %38 = sbr.rel (!%p36_p8) target bundleno = 22 (0x16), region = 180 }
 0x882   :  { %1735 = vsyncpa [#allocation4], 1 }
 0x883   :  { %1737 = vsyncpa [#allocation4 + $0x1], 1 }
 0x884   :  { %1738 = vsyncpa [#allocation7], 1 }
 0x885   :  { %1740 = vsyncpa [#allocation7 + $0x1], 1 }
 0x886   :  { %1741 = vsyncpa [#allocation10], 1 }
 0x887   :  { %1742 = vsyncpa [#allocation13], 1 }
 0x888   :  { %1743 = vsyncpa [#allocation16], 1 }
 0x889   :  { %1744 = vsyncpa [#allocation5], 1 }
 0x88a   :  { %1746 = vsyncpa [#allocation5 + $0x1], 1 }
 0x88b   :  { %1747 = vsyncpa [#allocation19], 1 }
 0x88c   :  { %1749 = vsyncpa [#allocation19 + $0x1], 1 }

</bundles_post_ra>
